<compile_context>
chip_gen: v7x
topology: tpu7x:2x2x1
jax: 0.10.0
libtpu: 0.0.40
codegen_flags: <defaults>
</compile_context>

<pallas_src>
import math
import jax
import jax.numpy as jnp
from jax import lax
from jax.experimental import pallas as pl
from jax.experimental.pallas import tpu as pltpu

# ----- small synthetic "roberta" config -----
B, S, H = 2, 8, 32          # batch, seq, hidden
NUM_HEADS, DH = 2, 16       # heads, head dim (NUM_HEADS * DH == H)
FFN = 64                    # intermediate size
VOCAB = 100
MAX_POS = 16
TYPE_VOCAB = 2
NUM_LAYERS = 2
PAD_IDX = 1                 # RoBERTa padding_idx
LN_EPS = 1e-5
NEG_INF = -1e30             # additive attention mask value
ATT_SCALE = 1.0 / math.sqrt(DH)


# ---------------- in-kernel helpers ----------------
def _layernorm(x, g, b):
    mu = jnp.mean(x, axis=-1, keepdims=True)
    var = jnp.mean((x - mu) ** 2, axis=-1, keepdims=True)
    return (x - mu) * lax.rsqrt(var + LN_EPS) * g + b


def _gelu(x):
    # TODO(synk): HF RoBERTa default act is exact erf-GELU; tanh approximation used here.
    c = math.sqrt(2.0 / math.pi)
    return 0.5 * x * (1.0 + jnp.tanh(c * (x + 0.044715 * x * x * x)))


# ---------------- fused Pallas kernel ----------------
def fused_forward_kernel(emb_ref, bias_ref, embg_ref, embb_ref,
                         wqkv_ref, bqkv_ref, wo_ref, bo_ref,
                         ln1g_ref, ln1b_ref,
                         w1_ref, b1_ref, w2_ref, b2_ref,
                         ln2g_ref, ln2b_ref,
                         rw_ref, rb_ref, out_ref):
    # one batch element per grid step; activations stay in VMEM across layers
    x = _layernorm(emb_ref[0], embg_ref[...], embb_ref[...])     # [S, H]
    bias_row = bias_ref[0]                                       # [1, S], hoisted (loop-invariant)

    def layer_body(l, x):
        # fused QKV projection: one [S,H] x [H,3H] MXU op instead of three
        qkv = jnp.dot(x, wqkv_ref[l],
                      preferred_element_type=jnp.float32) + bqkv_ref[l]   # [S, 3H]
        q = qkv[:, 0 * H:1 * H].reshape(S, NUM_HEADS, DH).swapaxes(0, 1)  # [NH, S, DH]
        k = qkv[:, 1 * H:2 * H].reshape(S, NUM_HEADS, DH).swapaxes(0, 1)
        v = qkv[:, 2 * H:3 * H].reshape(S, NUM_HEADS, DH).swapaxes(0, 1)

        # all heads in one batched contraction (no per-head loop / concat)
        scores = jnp.einsum('nqd,nkd->nqk', q, k,
                            preferred_element_type=jnp.float32) * ATT_SCALE
        scores = scores + bias_row[None]                          # [NH, S, S]
        scores = scores - jnp.max(scores, axis=-1, keepdims=True)
        p = jnp.exp(scores)
        p = p * pl.reciprocal(jnp.sum(p, axis=-1, keepdims=True), approx=True)
        ctx = jnp.einsum('nqk,nkd->nqd', p, v,
                         preferred_element_type=jnp.float32)      # [NH, S, DH]
        ctx = ctx.swapaxes(0, 1).reshape(S, H)                    # [S, H]

        attn = jnp.dot(ctx, wo_ref[l],
                       preferred_element_type=jnp.float32) + bo_ref[l]
        h1 = _layernorm(attn + x, ln1g_ref[l], ln1b_ref[l])

        ff = _gelu(jnp.dot(h1, w1_ref[l],
                           preferred_element_type=jnp.float32) + b1_ref[l])
        ff2 = jnp.dot(ff, w2_ref[l],
                      preferred_element_type=jnp.float32) + b2_ref[l]
        return _layernorm(ff2 + h1, ln2g_ref[l], ln2b_ref[l])

    x = lax.fori_loop(0, NUM_LAYERS, layer_body, x)

    # pooled_output = last_hidden_state.mean(dim=1) (unmasked, as in the module)
    pooled = jnp.sum(x, axis=0, keepdims=True) * (1.0 / S)        # [1, H]
    y = jnp.dot(pooled, rw_ref[...],
                preferred_element_type=jnp.float32) + rb_ref[...]  # [1, 1]
    out_ref[0] = y


# ---------------- pallas_call wrapper ----------------
def _const(shape):
    return pl.BlockSpec(shape, lambda b: (0,) * len(shape))


def roberta_fused_forward(emb, bias, p):
    in_specs = [
        pl.BlockSpec((1, S, H), lambda b: (b, 0, 0)),     # emb
        pl.BlockSpec((1, 1, S), lambda b: (b, 0, 0)),     # additive key mask
        _const((1, H)), _const((1, H)),                   # emb LN gamma/beta
        _const((NUM_LAYERS, H, 3 * H)), _const((NUM_LAYERS, 1, 3 * H)),  # wqkv, bqkv
        _const((NUM_LAYERS, H, H)), _const((NUM_LAYERS, 1, H)),          # wo, bo
        _const((NUM_LAYERS, 1, H)), _const((NUM_LAYERS, 1, H)),          # ln1 g/b
        _const((NUM_LAYERS, H, FFN)), _const((NUM_LAYERS, 1, FFN)),      # w1, b1
        _const((NUM_LAYERS, FFN, H)), _const((NUM_LAYERS, 1, H)),        # w2, b2
        _const((NUM_LAYERS, 1, H)), _const((NUM_LAYERS, 1, H)),          # ln2 g/b
        _const((H, 1)), _const((1, 1)),                   # regressor w, b
    ]
    out = pl.pallas_call(
        fused_forward_kernel,
        out_shape=jax.ShapeDtypeStruct((B, 1, 1), jnp.float32),
        grid=(B,),
        in_specs=in_specs,
        out_specs=pl.BlockSpec((1, 1, 1), lambda b: (b, 0, 0)),
        compiler_params=pltpu.CompilerParams(dimension_semantics=("parallel",)),
    )(emb, bias,
      p["emb_ln_g"], p["emb_ln_b"],
      p["wqkv"], p["bqkv"], p["wo"], p["bo"], p["ln1g"], p["ln1b"],
      p["w1"], p["b1"], p["w2"], p["b2"], p["ln2g"], p["ln2b"],
      p["reg_w"], p["reg_b"])
    return out.reshape(B, 1)


# ---------------- params & forward (glue) ----------------
def init_params(key):
    # generous split so we never run out of keys
    keys = iter(jax.random.split(key, 4 + 8 * NUM_LAYERS + 4))

    def dense(shape):
        return jax.random.normal(next(keys), shape, jnp.float32) * 0.02

    word = dense((VOCAB, H))
    word = word.at[PAD_IDX].set(0.0)   # padding_idx row is zeroed in RoBERTa
    return {
        "word_emb": word,
        "pos_emb": dense((MAX_POS, H)),
        "type_emb": dense((TYPE_VOCAB, H)),
        "emb_ln_g": jnp.ones((1, H), jnp.float32),
        "emb_ln_b": jnp.zeros((1, H), jnp.float32),
        # layer-stacked weights: leading axis = layer index
        "wqkv": dense((NUM_LAYERS, H, 3 * H)),
        "bqkv": dense((NUM_LAYERS, 1, 3 * H)),
        "wo": dense((NUM_LAYERS, H, H)),
        "bo": dense((NUM_LAYERS, 1, H)),
        "ln1g": jnp.ones((NUM_LAYERS, 1, H), jnp.float32),
        "ln1b": jnp.zeros((NUM_LAYERS, 1, H), jnp.float32),
        "w1": dense((NUM_LAYERS, H, FFN)),
        "b1": dense((NUM_LAYERS, 1, FFN)),
        "w2": dense((NUM_LAYERS, FFN, H)),
        "b2": dense((NUM_LAYERS, 1, H)),
        "ln2g": jnp.ones((NUM_LAYERS, 1, H), jnp.float32),
        "ln2b": jnp.zeros((NUM_LAYERS, 1, H), jnp.float32),
        "reg_w": dense((H, 1)),
        "reg_b": jnp.zeros((1, 1), jnp.float32),
    }


def roberta_regressor_forward(params, input_ids, attention_mask):
    mask_f = attention_mask.astype(jnp.float32)
    # RoBERTa position ids: cumsum over non-pad tokens, offset by padding_idx
    not_pad = (input_ids != PAD_IDX).astype(jnp.int32)
    pos_ids = jnp.cumsum(not_pad, axis=1) * not_pad + PAD_IDX

    emb = (jnp.take(params["word_emb"], input_ids, axis=0)
           + jnp.take(params["pos_emb"], pos_ids, axis=0)
           + params["type_emb"][0][None, None, :])          # token_type_ids == 0

    bias = ((1.0 - mask_f) * NEG_INF)[:, None, :]            # [B, 1, S] additive key mask
    return roberta_fused_forward(emb, bias, params)


if __name__ == "__main__":
    key = jax.random.PRNGKey(0)
    pkey, ikey = jax.random.split(key)
    params = init_params(pkey)

    input_ids = jax.random.randint(ikey, (B, S), 0, VOCAB, dtype=jnp.int32)
    attention_mask = jnp.ones((B, S), jnp.int32).at[1, 6:].set(0)
    input_ids = jnp.where(attention_mask == 1, input_ids, PAD_IDX)

    out = roberta_regressor_forward(params, input_ids, attention_mask)
    out = jax.block_until_ready(out)
    assert out.shape == (B, 1) and out.dtype == jnp.float32
    print("KERNEL_OK")
</pallas_src>

<mosaic_0001>
module attributes {stable_mosaic.version = 11 : i64} {
  func.func @fused_forward_kernel(%arg0: i32, %arg1: memref<1x8x32xf32, #tpu.memory_space<vmem>>, %arg2: memref<1x1x8xf32, #tpu.memory_space<vmem>>, %arg3: memref<1x32xf32, #tpu.memory_space<vmem>>, %arg4: memref<1x32xf32, #tpu.memory_space<vmem>>, %arg5: memref<2x32x96xf32, #tpu.memory_space<vmem>>, %arg6: memref<2x1x96xf32, #tpu.memory_space<vmem>>, %arg7: memref<2x32x32xf32, #tpu.memory_space<vmem>>, %arg8: memref<2x1x32xf32, #tpu.memory_space<vmem>>, %arg9: memref<2x1x32xf32, #tpu.memory_space<vmem>>, %arg10: memref<2x1x32xf32, #tpu.memory_space<vmem>>, %arg11: memref<2x32x64xf32, #tpu.memory_space<vmem>>, %arg12: memref<2x1x64xf32, #tpu.memory_space<vmem>>, %arg13: memref<2x64x32xf32, #tpu.memory_space<vmem>>, %arg14: memref<2x1x32xf32, #tpu.memory_space<vmem>>, %arg15: memref<2x1x32xf32, #tpu.memory_space<vmem>>, %arg16: memref<2x1x32xf32, #tpu.memory_space<vmem>>, %arg17: memref<32x1xf32, #tpu.memory_space<vmem>>, %arg18: memref<1x1xf32, #tpu.memory_space<vmem>>, %arg19: memref<1x1x1xf32, #tpu.memory_space<vmem>>) attributes {dimension_semantics = [#tpu.dimension_semantics<parallel>], iteration_bounds = array<i64: 2>, scalar_prefetch = 0 : i64, scratch_operands = 0 : i64, tpu.core_type = #tpu.core_type<tc>, window_params = [{transform_indices = @transform_0, window_bounds = array<i64: 1, 8, 32>}, {transform_indices = @transform_1, window_bounds = array<i64: 1, 1, 8>}, {pipeline_mode = #tpu.pipeline_mode<synchronous>, transform_indices = @transform_2, window_bounds = array<i64: 1, 32>}, {pipeline_mode = #tpu.pipeline_mode<synchronous>, transform_indices = @transform_3, window_bounds = array<i64: 1, 32>}, {pipeline_mode = #tpu.pipeline_mode<synchronous>, transform_indices = @transform_4, window_bounds = array<i64: 2, 32, 96>}, {pipeline_mode = #tpu.pipeline_mode<synchronous>, transform_indices = @transform_5, window_bounds = array<i64: 2, 1, 96>}, {pipeline_mode = #tpu.pipeline_mode<synchronous>, transform_indices = @transform_6, window_bounds = array<i64: 2, 32, 32>}, {pipeline_mode = #tpu.pipeline_mode<synchronous>, transform_indices = @transform_7, window_bounds = array<i64: 2, 1, 32>}, {pipeline_mode = #tpu.pipeline_mode<synchronous>, transform_indices = @transform_8, window_bounds = array<i64: 2, 1, 32>}, {pipeline_mode = #tpu.pipeline_mode<synchronous>, transform_indices = @transform_9, window_bounds = array<i64: 2, 1, 32>}, {pipeline_mode = #tpu.pipeline_mode<synchronous>, transform_indices = @transform_10, window_bounds = array<i64: 2, 32, 64>}, {pipeline_mode = #tpu.pipeline_mode<synchronous>, transform_indices = @transform_11, window_bounds = array<i64: 2, 1, 64>}, {pipeline_mode = #tpu.pipeline_mode<synchronous>, transform_indices = @transform_12, window_bounds = array<i64: 2, 64, 32>}, {pipeline_mode = #tpu.pipeline_mode<synchronous>, transform_indices = @transform_13, window_bounds = array<i64: 2, 1, 32>}, {pipeline_mode = #tpu.pipeline_mode<synchronous>, transform_indices = @transform_14, window_bounds = array<i64: 2, 1, 32>}, {pipeline_mode = #tpu.pipeline_mode<synchronous>, transform_indices = @transform_15, window_bounds = array<i64: 2, 1, 32>}, {pipeline_mode = #tpu.pipeline_mode<synchronous>, transform_indices = @transform_16, window_bounds = array<i64: 32, 1>}, {pipeline_mode = #tpu.pipeline_mode<synchronous>, transform_indices = @transform_17, window_bounds = array<i64: 1, 1>}, {transform_indices = @transform_18, window_bounds = array<i64: 1, 1, 1>}]} {
    %c0 = arith.constant 0 : index
    %c0_0 = arith.constant 0 : index
    %c0_1 = arith.constant 0 : index
    %0 = vector.load %arg1[%c0, %c0_0, %c0_1] : memref<1x8x32xf32, #tpu.memory_space<vmem>>, vector<1x8x32xf32>
    %1 = vector.shape_cast %0 : vector<1x8x32xf32> to vector<8x32xf32>
    %c0_2 = arith.constant 0 : index
    %c0_3 = arith.constant 0 : index
    %2 = vector.load %arg3[%c0_2, %c0_3] : memref<1x32xf32, #tpu.memory_space<vmem>>, vector<1x32xf32>
    %c0_4 = arith.constant 0 : index
    %c0_5 = arith.constant 0 : index
    %3 = vector.load %arg4[%c0_4, %c0_5] : memref<1x32xf32, #tpu.memory_space<vmem>>, vector<1x32xf32>
    %cst = arith.constant dense<0.000000e+00> : vector<8xf32>
    %4 = vector.multi_reduction <add>, %1, %cst [1] : vector<8x32xf32> to vector<8xf32>
    %5 = vector.shape_cast %4 : vector<8xf32> to vector<8x1xf32>
    %cst_6 = arith.constant 3.200000e+01 : f32
    %6 = vector.broadcast %cst_6 : f32 to vector<8x1xf32>
    %7 = arith.divf %5, %6 : vector<8x1xf32>
    %8 = vector.broadcast %7 : vector<8x1xf32> to vector<8x32xf32>
    %9 = arith.subf %1, %8 : vector<8x32xf32>
    %10 = arith.mulf %9, %9 : vector<8x32xf32>
    %cst_7 = arith.constant dense<0.000000e+00> : vector<8xf32>
    %11 = vector.multi_reduction <add>, %10, %cst_7 [1] : vector<8x32xf32> to vector<8xf32>
    %12 = vector.shape_cast %11 : vector<8xf32> to vector<8x1xf32>
    %cst_8 = arith.constant 3.200000e+01 : f32
    %13 = vector.broadcast %cst_8 : f32 to vector<8x1xf32>
    %14 = arith.divf %12, %13 : vector<8x1xf32>
    %15 = vector.broadcast %7 : vector<8x1xf32> to vector<8x32xf32>
    %16 = arith.subf %1, %15 : vector<8x32xf32>
    %cst_9 = arith.constant 9.99999974E-6 : f32
    %17 = vector.broadcast %cst_9 : f32 to vector<8x1xf32>
    %18 = arith.addf %14, %17 : vector<8x1xf32>
    %19 = math.rsqrt %18 : vector<8x1xf32>
    %20 = vector.broadcast %19 : vector<8x1xf32> to vector<8x32xf32>
    %21 = arith.mulf %16, %20 : vector<8x32xf32>
    %22 = vector.broadcast %2 : vector<1x32xf32> to vector<8x32xf32>
    %23 = arith.mulf %21, %22 : vector<8x32xf32>
    %24 = vector.broadcast %3 : vector<1x32xf32> to vector<8x32xf32>
    %25 = arith.addf %23, %24 : vector<8x32xf32>
    %c0_10 = arith.constant 0 : index
    %c0_11 = arith.constant 0 : index
    %c0_12 = arith.constant 0 : index
    %26 = vector.load %arg2[%c0_10, %c0_11, %c0_12] : memref<1x1x8xf32, #tpu.memory_space<vmem>>, vector<1x1x8xf32>
    %27 = vector.shape_cast %26 : vector<1x1x8xf32> to vector<1x8xf32>
    %c0_i32 = arith.constant 0 : i32
    %c2_i32 = arith.constant 2 : i32
    %28 = arith.addi %c0_i32, %c2_i32 : i32
    %c1_i32 = arith.constant 1 : i32
    %29 = scf.for %arg20 = %c0_i32 to %28 step %c1_i32 iter_args(%arg21 = %25) -> (vector<8x32xf32>)  : i32 {
      %41 = arith.index_cast %arg20 : i32 to index
      %c0_24 = arith.constant 0 : index
      %c0_25 = arith.constant 0 : index
      %42 = vector.load %arg5[%41, %c0_24, %c0_25] : memref<2x32x96xf32, #tpu.memory_space<vmem>>, vector<1x32x96xf32>
      %43 = vector.shape_cast %42 : vector<1x32x96xf32> to vector<32x96xf32>
      %cst_26 = arith.constant dense<0.000000e+00> : vector<8x96xf32>
      %44 = tpu.matmul %arg21, %43, %cst_26 {dimension_numbers = #tpu.dot_dimension_numbers<[1], [0], [0], [1], [0, 0, 1, 1], [], []>} : vector<8x32xf32>, vector<32x96xf32>, vector<8x96xf32> -> vector<8x96xf32>
      %45 = arith.index_cast %arg20 : i32 to index
      %c0_27 = arith.constant 0 : index
      %c0_28 = arith.constant 0 : index
      %46 = vector.load %arg6[%45, %c0_27, %c0_28] : memref<2x1x96xf32, #tpu.memory_space<vmem>>, vector<1x1x96xf32>
      %47 = vector.shape_cast %46 : vector<1x1x96xf32> to vector<1x96xf32>
      %48 = vector.broadcast %47 : vector<1x96xf32> to vector<8x96xf32>
      %49 = arith.addf %44, %48 : vector<8x96xf32>
      %50 = vector.extract_strided_slice %49 {offsets = [0, 0], sizes = [8, 32], strides = [1, 1]} : vector<8x96xf32> to vector<8x32xf32>
      %51 = vector.shape_cast %50 : vector<8x32xf32> to vector<8x2x16xf32>
      %52 = tpu.transpose %51, [1, 0, 2] : vector<8x2x16xf32> -> vector<2x8x16xf32>
      %53 = vector.extract_strided_slice %49 {offsets = [0, 32], sizes = [8, 32], strides = [1, 1]} : vector<8x96xf32> to vector<8x32xf32>
      %54 = vector.shape_cast %53 : vector<8x32xf32> to vector<8x2x16xf32>
      %55 = tpu.transpose %54, [1, 0, 2] : vector<8x2x16xf32> -> vector<2x8x16xf32>
      %56 = vector.extract_strided_slice %49 {offsets = [0, 64], sizes = [8, 32], strides = [1, 1]} : vector<8x96xf32> to vector<8x32xf32>
      %57 = vector.shape_cast %56 : vector<8x32xf32> to vector<8x2x16xf32>
      %58 = tpu.transpose %57, [1, 0, 2] : vector<8x2x16xf32> -> vector<2x8x16xf32>
      "tpu.trace_start"() <{level = 10 : i32, message = "nqd,nkd->nqk"}> : () -> ()
      %cst_29 = arith.constant dense<0.000000e+00> : vector<2x8x8xf32>
      %59 = tpu.matmul %52, %55, %cst_29 {dimension_numbers = #tpu.dot_dimension_numbers<[2], [2], [1], [1], [0, 0, 0, 1, 1, 1], [0], [0]>} : vector<2x8x16xf32>, vector<2x8x16xf32>, vector<2x8x8xf32> -> vector<2x8x8xf32>
      "tpu.trace_stop"() : () -> ()
      %cst_30 = arith.constant 2.500000e-01 : f32
      %60 = vector.broadcast %cst_30 : f32 to vector<2x8x8xf32>
      %61 = arith.mulf %59, %60 : vector<2x8x8xf32>
      %62 = vector.shape_cast %27 : vector<1x8xf32> to vector<1x1x8xf32>
      %63 = vector.broadcast %62 : vector<1x1x8xf32> to vector<2x8x8xf32>
      %64 = arith.addf %61, %63 : vector<2x8x8xf32>
      %cst_31 = arith.constant dense<0xFF800000> : vector<2x8xf32>
      %65 = vector.multi_reduction <maximumf>, %64, %cst_31 [2] : vector<2x8x8xf32> to vector<2x8xf32>
      %66 = vector.shape_cast %65 : vector<2x8xf32> to vector<2x8x1xf32>
      %67 = vector.broadcast %66 : vector<2x8x1xf32> to vector<2x8x8xf32>
      %68 = arith.subf %64, %67 : vector<2x8x8xf32>
      %69 = math.exp %68 : vector<2x8x8xf32>
      %cst_32 = arith.constant dense<0.000000e+00> : vector<2x8xf32>
      %70 = vector.multi_reduction <add>, %69, %cst_32 [2] : vector<2x8x8xf32> to vector<2x8xf32>
      %71 = vector.shape_cast %70 : vector<2x8xf32> to vector<2x8x1xf32>
      %72 = tpu.reciprocal %71 {approx = true} : vector<2x8x1xf32> -> vector<2x8x1xf32>
      %73 = vector.broadcast %72 : vector<2x8x1xf32> to vector<2x8x8xf32>
      %74 = arith.mulf %69, %73 : vector<2x8x8xf32>
      "tpu.trace_start"() <{level = 10 : i32, message = "nqk,nkd->nqd"}> : () -> ()
      %cst_33 = arith.constant dense<0.000000e+00> : vector<2x8x16xf32>
      %75 = tpu.matmul %74, %58, %cst_33 {dimension_numbers = #tpu.dot_dimension_numbers<[2], [1], [1], [2], [0, 0, 0, 1, 1, 2], [0], [0]>} : vector<2x8x8xf32>, vector<2x8x16xf32>, vector<2x8x16xf32> -> vector<2x8x16xf32>
      "tpu.trace_stop"() : () -> ()
      %76 = tpu.transpose %75, [1, 0, 2] : vector<2x8x16xf32> -> vector<8x2x16xf32>
      %77 = vector.shape_cast %76 : vector<8x2x16xf32> to vector<8x32xf32>
      %78 = arith.index_cast %arg20 : i32 to index
      %c0_34 = arith.constant 0 : index
      %c0_35 = arith.constant 0 : index
      %79 = vector.load %arg7[%78, %c0_34, %c0_35] : memref<2x32x32xf32, #tpu.memory_space<vmem>>, vector<1x32x32xf32>
      %80 = vector.shape_cast %79 : vector<1x32x32xf32> to vector<32x32xf32>
      %cst_36 = arith.constant dense<0.000000e+00> : vector<8x32xf32>
      %81 = tpu.matmul %77, %80, %cst_36 {dimension_numbers = #tpu.dot_dimension_numbers<[1], [0], [0], [1], [0, 0, 1, 1], [], []>} : vector<8x32xf32>, vector<32x32xf32>, vector<8x32xf32> -> vector<8x32xf32>
      %82 = arith.index_cast %arg20 : i32 to index
      %c0_37 = arith.constant 0 : index
      %c0_38 = arith.constant 0 : index
      %83 = vector.load %arg8[%82, %c0_37, %c0_38] : memref<2x1x32xf32, #tpu.memory_space<vmem>>, vector<1x1x32xf32>
      %84 = vector.shape_cast %83 : vector<1x1x32xf32> to vector<1x32xf32>
      %85 = vector.broadcast %84 : vector<1x32xf32> to vector<8x32xf32>
      %86 = arith.addf %81, %85 : vector<8x32xf32>
      %87 = arith.addf %86, %arg21 : vector<8x32xf32>
      %88 = arith.index_cast %arg20 : i32 to index
      %c0_39 = arith.constant 0 : index
      %c0_40 = arith.constant 0 : index
      %89 = vector.load %arg9[%88, %c0_39, %c0_40] : memref<2x1x32xf32, #tpu.memory_space<vmem>>, vector<1x1x32xf32>
      %90 = vector.shape_cast %89 : vector<1x1x32xf32> to vector<1x32xf32>
      %91 = arith.index_cast %arg20 : i32 to index
      %c0_41 = arith.constant 0 : index
      %c0_42 = arith.constant 0 : index
      %92 = vector.load %arg10[%91, %c0_41, %c0_42] : memref<2x1x32xf32, #tpu.memory_space<vmem>>, vector<1x1x32xf32>
      %93 = vector.shape_cast %92 : vector<1x1x32xf32> to vector<1x32xf32>
      %cst_43 = arith.constant dense<0.000000e+00> : vector<8xf32>
      %94 = vector.multi_reduction <add>, %87, %cst_43 [1] : vector<8x32xf32> to vector<8xf32>
      %95 = vector.shape_cast %94 : vector<8xf32> to vector<8x1xf32>
      %cst_44 = arith.constant 3.200000e+01 : f32
      %96 = vector.broadcast %cst_44 : f32 to vector<8x1xf32>
      %97 = arith.divf %95, %96 : vector<8x1xf32>
      %98 = vector.broadcast %97 : vector<8x1xf32> to vector<8x32xf32>
      %99 = arith.subf %87, %98 : vector<8x32xf32>
      %100 = arith.mulf %99, %99 : vector<8x32xf32>
      %cst_45 = arith.constant dense<0.000000e+00> : vector<8xf32>
      %101 = vector.multi_reduction <add>, %100, %cst_45 [1] : vector<8x32xf32> to vector<8xf32>
      %102 = vector.shape_cast %101 : vector<8xf32> to vector<8x1xf32>
      %cst_46 = arith.constant 3.200000e+01 : f32
      %103 = vector.broadcast %cst_46 : f32 to vector<8x1xf32>
      %104 = arith.divf %102, %103 : vector<8x1xf32>
      %105 = vector.broadcast %97 : vector<8x1xf32> to vector<8x32xf32>
      %106 = arith.subf %87, %105 : vector<8x32xf32>
      %cst_47 = arith.constant 9.99999974E-6 : f32
      %107 = vector.broadcast %cst_47 : f32 to vector<8x1xf32>
      %108 = arith.addf %104, %107 : vector<8x1xf32>
      %109 = math.rsqrt %108 : vector<8x1xf32>
      %110 = vector.broadcast %109 : vector<8x1xf32> to vector<8x32xf32>
      %111 = arith.mulf %106, %110 : vector<8x32xf32>
      %112 = vector.broadcast %90 : vector<1x32xf32> to vector<8x32xf32>
      %113 = arith.mulf %111, %112 : vector<8x32xf32>
      %114 = vector.broadcast %93 : vector<1x32xf32> to vector<8x32xf32>
      %115 = arith.addf %113, %114 : vector<8x32xf32>
      %116 = arith.index_cast %arg20 : i32 to index
      %c0_48 = arith.constant 0 : index
      %c0_49 = arith.constant 0 : index
      %117 = vector.load %arg11[%116, %c0_48, %c0_49] : memref<2x32x64xf32, #tpu.memory_space<vmem>>, vector<1x32x64xf32>
      %118 = vector.shape_cast %117 : vector<1x32x64xf32> to vector<32x64xf32>
      %cst_50 = arith.constant dense<0.000000e+00> : vector<8x64xf32>
      %119 = tpu.matmul %115, %118, %cst_50 {dimension_numbers = #tpu.dot_dimension_numbers<[1], [0], [0], [1], [0, 0, 1, 1], [], []>} : vector<8x32xf32>, vector<32x64xf32>, vector<8x64xf32> -> vector<8x64xf32>
      %120 = arith.index_cast %arg20 : i32 to index
      %c0_51 = arith.constant 0 : index
      %c0_52 = arith.constant 0 : index
      %121 = vector.load %arg12[%120, %c0_51, %c0_52] : memref<2x1x64xf32, #tpu.memory_space<vmem>>, vector<1x1x64xf32>
      %122 = vector.shape_cast %121 : vector<1x1x64xf32> to vector<1x64xf32>
      %123 = vector.broadcast %122 : vector<1x64xf32> to vector<8x64xf32>
      %124 = arith.addf %119, %123 : vector<8x64xf32>
      %cst_53 = arith.constant 5.000000e-01 : f32
      %125 = vector.broadcast %cst_53 : f32 to vector<8x64xf32>
      %126 = arith.mulf %125, %124 : vector<8x64xf32>
      %cst_54 = arith.constant 4.471500e-02 : f32
      %127 = vector.broadcast %cst_54 : f32 to vector<8x64xf32>
      %128 = arith.mulf %127, %124 : vector<8x64xf32>
      %129 = arith.mulf %128, %124 : vector<8x64xf32>
      %130 = arith.mulf %129, %124 : vector<8x64xf32>
      %131 = arith.addf %124, %130 : vector<8x64xf32>
      %cst_55 = arith.constant 0.797884583 : f32
      %132 = vector.broadcast %cst_55 : f32 to vector<8x64xf32>
      %133 = arith.mulf %132, %131 : vector<8x64xf32>
      %134 = math.tanh %133 : vector<8x64xf32>
      %cst_56 = arith.constant 1.000000e+00 : f32
      %135 = vector.broadcast %cst_56 : f32 to vector<8x64xf32>
      %136 = arith.addf %135, %134 : vector<8x64xf32>
      %137 = arith.mulf %126, %136 : vector<8x64xf32>
      %138 = arith.index_cast %arg20 : i32 to index
      %c0_57 = arith.constant 0 : index
      %c0_58 = arith.constant 0 : index
      %139 = vector.load %arg13[%138, %c0_57, %c0_58] : memref<2x64x32xf32, #tpu.memory_space<vmem>>, vector<1x64x32xf32>
      %140 = vector.shape_cast %139 : vector<1x64x32xf32> to vector<64x32xf32>
      %cst_59 = arith.constant dense<0.000000e+00> : vector<8x32xf32>
      %141 = tpu.matmul %137, %140, %cst_59 {dimension_numbers = #tpu.dot_dimension_numbers<[1], [0], [0], [1], [0, 0, 1, 1], [], []>} : vector<8x64xf32>, vector<64x32xf32>, vector<8x32xf32> -> vector<8x32xf32>
      %142 = arith.index_cast %arg20 : i32 to index
      %c0_60 = arith.constant 0 : index
      %c0_61 = arith.constant 0 : index
      %143 = vector.load %arg14[%142, %c0_60, %c0_61] : memref<2x1x32xf32, #tpu.memory_space<vmem>>, vector<1x1x32xf32>
      %144 = vector.shape_cast %143 : vector<1x1x32xf32> to vector<1x32xf32>
      %145 = vector.broadcast %144 : vector<1x32xf32> to vector<8x32xf32>
      %146 = arith.addf %141, %145 : vector<8x32xf32>
      %147 = arith.addf %146, %115 : vector<8x32xf32>
      %148 = arith.index_cast %arg20 : i32 to index
      %c0_62 = arith.constant 0 : index
      %c0_63 = arith.constant 0 : index
      %149 = vector.load %arg15[%148, %c0_62, %c0_63] : memref<2x1x32xf32, #tpu.memory_space<vmem>>, vector<1x1x32xf32>
      %150 = vector.shape_cast %149 : vector<1x1x32xf32> to vector<1x32xf32>
      %151 = arith.index_cast %arg20 : i32 to index
      %c0_64 = arith.constant 0 : index
      %c0_65 = arith.constant 0 : index
      %152 = vector.load %arg16[%151, %c0_64, %c0_65] : memref<2x1x32xf32, #tpu.memory_space<vmem>>, vector<1x1x32xf32>
      %153 = vector.shape_cast %152 : vector<1x1x32xf32> to vector<1x32xf32>
      %cst_66 = arith.constant dense<0.000000e+00> : vector<8xf32>
      %154 = vector.multi_reduction <add>, %147, %cst_66 [1] : vector<8x32xf32> to vector<8xf32>
      %155 = vector.shape_cast %154 : vector<8xf32> to vector<8x1xf32>
      %cst_67 = arith.constant 3.200000e+01 : f32
      %156 = vector.broadcast %cst_67 : f32 to vector<8x1xf32>
      %157 = arith.divf %155, %156 : vector<8x1xf32>
      %158 = vector.broadcast %157 : vector<8x1xf32> to vector<8x32xf32>
      %159 = arith.subf %147, %158 : vector<8x32xf32>
      %160 = arith.mulf %159, %159 : vector<8x32xf32>
      %cst_68 = arith.constant dense<0.000000e+00> : vector<8xf32>
      %161 = vector.multi_reduction <add>, %160, %cst_68 [1] : vector<8x32xf32> to vector<8xf32>
      %162 = vector.shape_cast %161 : vector<8xf32> to vector<8x1xf32>
      %cst_69 = arith.constant 3.200000e+01 : f32
      %163 = vector.broadcast %cst_69 : f32 to vector<8x1xf32>
      %164 = arith.divf %162, %163 : vector<8x1xf32>
      %165 = vector.broadcast %157 : vector<8x1xf32> to vector<8x32xf32>
      %166 = arith.subf %147, %165 : vector<8x32xf32>
      %cst_70 = arith.constant 9.99999974E-6 : f32
      %167 = vector.broadcast %cst_70 : f32 to vector<8x1xf32>
      %168 = arith.addf %164, %167 : vector<8x1xf32>
      %169 = math.rsqrt %168 : vector<8x1xf32>
      %170 = vector.broadcast %169 : vector<8x1xf32> to vector<8x32xf32>
      %171 = arith.mulf %166, %170 : vector<8x32xf32>
      %172 = vector.broadcast %150 : vector<1x32xf32> to vector<8x32xf32>
      %173 = arith.mulf %171, %172 : vector<8x32xf32>
      %174 = vector.broadcast %153 : vector<1x32xf32> to vector<8x32xf32>
      %175 = arith.addf %173, %174 : vector<8x32xf32>
      scf.yield %175 : vector<8x32xf32>
    }
    %c2_i32_13 = arith.constant 2 : i32
    %cst_14 = arith.constant dense<0.000000e+00> : vector<32xf32>
    %30 = vector.multi_reduction <add>, %29, %cst_14 [0] : vector<8x32xf32> to vector<32xf32>
    %31 = vector.shape_cast %30 : vector<32xf32> to vector<1x32xf32>
    %cst_15 = arith.constant 1.250000e-01 : f32
    %32 = vector.broadcast %cst_15 : f32 to vector<1x32xf32>
    %33 = arith.mulf %31, %32 : vector<1x32xf32>
    %c0_16 = arith.constant 0 : index
    %c0_17 = arith.constant 0 : index
    %34 = vector.load %arg17[%c0_16, %c0_17] : memref<32x1xf32, #tpu.memory_space<vmem>>, vector<32x1xf32>
    %cst_18 = arith.constant dense<0.000000e+00> : vector<1x1xf32>
    %35 = tpu.matmul %33, %34, %cst_18 {dimension_numbers = #tpu.dot_dimension_numbers<[1], [0], [0], [1], [0, 0, 1, 1], [], []>} : vector<1x32xf32>, vector<32x1xf32>, vector<1x1xf32> -> vector<1x1xf32>
    %c0_19 = arith.constant 0 : index
    %c0_20 = arith.constant 0 : index
    %36 = vector.load %arg18[%c0_19, %c0_20] : memref<1x1xf32, #tpu.memory_space<vmem>>, vector<1x1xf32>
    %37 = arith.addf %35, %36 : vector<1x1xf32>
    %c0_21 = arith.constant 0 : index
    %c0_22 = arith.constant 0 : index
    %c0_23 = arith.constant 0 : index
    %38 = vector.load %arg19[%c0_21, %c0_22, %c0_23] : memref<1x1x1xf32, #tpu.memory_space<vmem>>, vector<1x1x1xf32>
    %39 = vector.shape_cast %38 : vector<1x1x1xf32> to vector<1x1xf32>
    %40 = vector.shape_cast %37 : vector<1x1xf32> to vector<1x1x1xf32>
    tpu.vector_store %arg19[%c0_21, %c0_22, %c0_23], %40 {strides = array<i32>} : memref<1x1x1xf32, #tpu.memory_space<vmem>>, vector<1x1x1xf32>,
    return
  }
  func.func @transform_0(%arg0: i32) -> (i32, i32, i32) {
    %c0_i32 = arith.constant 0 : i32
    %c0_i32_0 = arith.constant 0 : i32
    %c0_i32_1 = arith.constant 0 : i32
    return %arg0, %c0_i32, %c0_i32_0 : i32, i32, i32
  }
  func.func @transform_1(%arg0: i32) -> (i32, i32, i32) {
    %c0_i32 = arith.constant 0 : i32
    %c0_i32_0 = arith.constant 0 : i32
    %c0_i32_1 = arith.constant 0 : i32
    return %arg0, %c0_i32, %c0_i32_0 : i32, i32, i32
  }
  func.func @transform_2(%arg0: i32) -> (i32, i32) {
    %c0_i32 = arith.constant 0 : i32
    %c0_i32_0 = arith.constant 0 : i32
    %c0_i32_1 = arith.constant 0 : i32
    return %c0_i32, %c0_i32_0 : i32, i32
  }
  func.func @transform_3(%arg0: i32) -> (i32, i32) {
    %c0_i32 = arith.constant 0 : i32
    %c0_i32_0 = arith.constant 0 : i32
    %c0_i32_1 = arith.constant 0 : i32
    return %c0_i32, %c0_i32_0 : i32, i32
  }
  func.func @transform_4(%arg0: i32) -> (i32, i32, i32) {
    %c0_i32 = arith.constant 0 : i32
    %c0_i32_0 = arith.constant 0 : i32
    %c0_i32_1 = arith.constant 0 : i32
    %c0_i32_2 = arith.constant 0 : i32
    return %c0_i32, %c0_i32_0, %c0_i32_1 : i32, i32, i32
  }
  func.func @transform_5(%arg0: i32) -> (i32, i32, i32) {
    %c0_i32 = arith.constant 0 : i32
    %c0_i32_0 = arith.constant 0 : i32
    %c0_i32_1 = arith.constant 0 : i32
    %c0_i32_2 = arith.constant 0 : i32
    return %c0_i32, %c0_i32_0, %c0_i32_1 : i32, i32, i32
  }
  func.func @transform_6(%arg0: i32) -> (i32, i32, i32) {
    %c0_i32 = arith.constant 0 : i32
    %c0_i32_0 = arith.constant 0 : i32
    %c0_i32_1 = arith.constant 0 : i32
    %c0_i32_2 = arith.constant 0 : i32
    return %c0_i32, %c0_i32_0, %c0_i32_1 : i32, i32, i32
  }
  func.func @transform_7(%arg0: i32) -> (i32, i32, i32) {
    %c0_i32 = arith.constant 0 : i32
    %c0_i32_0 = arith.constant 0 : i32
    %c0_i32_1 = arith.constant 0 : i32
    %c0_i32_2 = arith.constant 0 : i32
    return %c0_i32, %c0_i32_0, %c0_i32_1 : i32, i32, i32
  }
  func.func @transform_8(%arg0: i32) -> (i32, i32, i32) {
    %c0_i32 = arith.constant 0 : i32
    %c0_i32_0 = arith.constant 0 : i32
    %c0_i32_1 = arith.constant 0 : i32
    %c0_i32_2 = arith.constant 0 : i32
    return %c0_i32, %c0_i32_0, %c0_i32_1 : i32, i32, i32
  }
  func.func @transform_9(%arg0: i32) -> (i32, i32, i32) {
    %c0_i32 = arith.constant 0 : i32
    %c0_i32_0 = arith.constant 0 : i32
    %c0_i32_1 = arith.constant 0 : i32
    %c0_i32_2 = arith.constant 0 : i32
    return %c0_i32, %c0_i32_0, %c0_i32_1 : i32, i32, i32
  }
  func.func @transform_10(%arg0: i32) -> (i32, i32, i32) {
    %c0_i32 = arith.constant 0 : i32
    %c0_i32_0 = arith.constant 0 : i32
    %c0_i32_1 = arith.constant 0 : i32
    %c0_i32_2 = arith.constant 0 : i32
    return %c0_i32, %c0_i32_0, %c0_i32_1 : i32, i32, i32
  }
  func.func @transform_11(%arg0: i32) -> (i32, i32, i32) {
    %c0_i32 = arith.constant 0 : i32
    %c0_i32_0 = arith.constant 0 : i32
    %c0_i32_1 = arith.constant 0 : i32
    %c0_i32_2 = arith.constant 0 : i32
    return %c0_i32, %c0_i32_0, %c0_i32_1 : i32, i32, i32
  }
  func.func @transform_12(%arg0: i32) -> (i32, i32, i32) {
    %c0_i32 = arith.constant 0 : i32
    %c0_i32_0 = arith.constant 0 : i32
    %c0_i32_1 = arith.constant 0 : i32
    %c0_i32_2 = arith.constant 0 : i32
    return %c0_i32, %c0_i32_0, %c0_i32_1 : i32, i32, i32
  }
  func.func @transform_13(%arg0: i32) -> (i32, i32, i32) {
    %c0_i32 = arith.constant 0 : i32
    %c0_i32_0 = arith.constant 0 : i32
    %c0_i32_1 = arith.constant 0 : i32
    %c0_i32_2 = arith.constant 0 : i32
    return %c0_i32, %c0_i32_0, %c0_i32_1 : i32, i32, i32
  }
  func.func @transform_14(%arg0: i32) -> (i32, i32, i32) {
    %c0_i32 = arith.constant 0 : i32
    %c0_i32_0 = arith.constant 0 : i32
    %c0_i32_1 = arith.constant 0 : i32
    %c0_i32_2 = arith.constant 0 : i32
    return %c0_i32, %c0_i32_0, %c0_i32_1 : i32, i32, i32
  }
  func.func @transform_15(%arg0: i32) -> (i32, i32, i32) {
    %c0_i32 = arith.constant 0 : i32
    %c0_i32_0 = arith.constant 0 : i32
    %c0_i32_1 = arith.constant 0 : i32
    %c0_i32_2 = arith.constant 0 : i32
    return %c0_i32, %c0_i32_0, %c0_i32_1 : i32, i32, i32
  }
  func.func @transform_16(%arg0: i32) -> (i32, i32) {
    %c0_i32 = arith.constant 0 : i32
    %c0_i32_0 = arith.constant 0 : i32
    %c0_i32_1 = arith.constant 0 : i32
    return %c0_i32, %c0_i32_0 : i32, i32
  }
  func.func @transform_17(%arg0: i32) -> (i32, i32) {
    %c0_i32 = arith.constant 0 : i32
    %c0_i32_0 = arith.constant 0 : i32
    %c0_i32_1 = arith.constant 0 : i32
    return %c0_i32, %c0_i32_0 : i32, i32
  }
  func.func @transform_18(%arg0: i32) -> (i32, i32, i32) {
    %c0_i32 = arith.constant 0 : i32
    %c0_i32_0 = arith.constant 0 : i32
    %c0_i32_1 = arith.constant 0 : i32
    return %arg0, %c0_i32, %c0_i32_0 : i32, i32, i32
  }
}

</mosaic_0001>

<bundles_post_ra>
// kernel: tpu_custom_call.1
= control target key start
LH: loop header
LB: loop body
LE: loop exit
PB: predicated region body
PF: predicated region fallthrough
CT: control target
= control target key end

     0   :  { %s3330_s0 = inlined_call_operand.vmem [shape: f32[2,8,32], index: 0, kind: input, shape index: {}]   ;;  %s3331_s1 = inlined_call_operand.vmem [shape: f32[2,1,8], index: 1, kind: input, shape index: {}]   ;;  %s3332_s2 = inlined_call_operand.hbm [shape: f32[1,32], index: 2, kind: input, shape index: {}]   ;;  %s3333_s3 = inlined_call_operand.hbm [shape: f32[1,32], index: 3, kind: input, shape index: {}]   ;;  %s3334_s4 = inlined_call_operand.vmem [shape: f32[2,32,96], index: 4, kind: input, shape index: {}]   ;;  %s3335_s5 = inlined_call_operand.hbm [shape: f32[2,1,96], index: 5, kind: input, shape index: {}]   ;;  %s3336_s6 = inlined_call_operand.vmem [shape: f32[2,32,32], index: 6, kind: input, shape index: {}]   ;;  %s3337_s7 = inlined_call_operand.hbm [shape: f32[2,1,32], index: 7, kind: input, shape index: {}]   ;;  %s3338_s8 = inlined_call_operand.hbm [shape: f32[2,1,32], index: 8, kind: input, shape index: {}]   ;;  %s3339_s9 = inlined_call_operand.hbm [shape: f32[2,1,32], index: 9, kind: input, shape index: {}]   ;;  %s3340_s10 = inlined_call_operand.vmem [shape: f32[2,32,64], index: 10, kind: input, shape index: {}]   ;;  %s3341_s11 = inlined_call_operand.hbm [shape: f32[2,1,64], index: 11, kind: input, shape index: {}]   ;;  %s3342_s12 = inlined_call_operand.vmem [shape: f32[2,64,32], index: 12, kind: input, shape index: {}]   ;;  %s3343_s13 = inlined_call_operand.vmem [shape: f32[2,1,32], index: 13, kind: input, shape index: {}]   ;;  %s3344_s14 = inlined_call_operand.vmem [shape: f32[2,1,32], index: 14, kind: input, shape index: {}]   ;;  %s3345_s15 = inlined_call_operand.vmem [shape: f32[2,1,32], index: 15, kind: input, shape index: {}]   ;;  %s3346_s16 = inlined_call_operand.vmem [shape: f32[32,1], index: 16, kind: input, shape index: {}]   ;;  %s3347_s17 = inlined_call_operand.<no memory space> [shape: f32[1,1], index: 17, kind: input, shape index: {}]   ;;  %s3348_s18 = inlined_call_operand.vmem [shape: f32[2,1,1], index: 18, kind: output, shape index: {}]  }
   0x1   :  { %3358 = sst [smem:[#allocation19_spill]] %s3330_s0  ;;  %v23_v0 = vstv %s3347_s17 }
   0x2   :  { %3359 = sst [smem:[#allocation20_spill]] %s3331_s1  ;;  %24 = vst [vmem:[#allocation2] sm:$0x1] %v23_v0 }
   0x3   :  { %3360 = sst [smem:[#allocation21_spill]] %s3332_s2 }
   0x4   :  { %3361 = sst [smem:[#allocation22_spill]] %s3333_s3 }
   0x5   :  { %3362 = sst [smem:[#allocation23_spill]] %s3335_s5 }
   0x6   :  { %3363 = sst [smem:[#allocation24_spill]] %s3346_s16 }
   0x7   :  { %25 = vsyncpa [#allocation4], 0 }
   0x8   :  { %26 = vsyncpa [#allocation6], 0 }
   0x9   :  { %27 = vsyncpa [#allocation9], 0 }
   0xa   :  { %28 = vsyncpa [#allocation12], 0  ;;  %s2891_s29 = smov 0  }
   0xb LB: > { %3364 = sst [smem:[#allocation18_spill]] %s2762_s29  ;;  %s2772_s30 = smov [#allocation5]   ;;  %s2762_s29 = sphi %s2891_s29, %s34_s29  }
   0xc   : > { %s477_s0 = sshll.u32 %s2772_s30, 4  ;;  %s2897_s19 = sadd.s32 4294967295, %s2762_s29   ;;  %s2902_s0 = int_to_ptr.vmem [resolvable:$true] %s477_s0 }
   0xd   : > { %p2203_p0 = scmp.ge.s32.totalorder %s2762_s29, 1  ;;  %p453_p1 = scmp.lt.s32.totalorder %s2762_s29, 3 }
   0xe   : > { %p3352_p2 = scmp.eq.s32.totalorder %s2897_s19, 0  ;;  %s2773_s1 = smov [#allocation8]  }
   0xf   : > { %p2904_p3 = pnand %p2203_p0, %p453_p1  ;;  %s506_s20 = sshll.u32 %s2773_s1, 4  ;;  %s2910_s20 = int_to_ptr.vmem [resolvable:$true] %s506_s20 }
  0x10   : > { %s2774_s22 = smov [#allocation11]   ;;  %s2775_s23 = smov [#allocation3]  }
  0x11   : > { %s3365_s17 = scalar_select %p2904_p3, 1, 0 }
  0x12   : > { %p2439_p4 = pneg %p2904_p3  ;;  %s532_s2 = sshll.u32 %s2774_s22, 4  ;;  %s2918_s2 = int_to_ptr.vmem [resolvable:$true] %s532_s2 }
  0x13   : > { %s2920_s24 = sshll.u32 %s2775_s23, 4  ;;  %s3367_s3 = sld [smem:[#allocation22_spill]]  ;;  %s467_s24 = int_to_ptr.vmem [resolvable:$true] %s2920_s24 }
  0x14   : > { %p2914_p5 = pnand %p3352_p2, %p2439_p4 }
  0x16   : > { %p2930_p7 = pneg %p2914_p5 }
  0x19   : > { %s2536_s27 = scalar_lea.hbm %s3367_s3, 16 }
  0x1a   : > { %p2537_p6 = scmp.ne.s32.totalorder %s3367_s3, %s2536_s27  ;;  %p2543_p10 = scmp.lt.u32.totalorder %s2536_s27, %s3367_s3 }
  0x1c   : > { %p2539_p8 = pnand %p2930_p7, %p2537_p6 }
  0x1e   : > { %p2540_p9 = pneg %p2539_p8 }
  0x20   : > { %p2545_p11 = pnand %p2543_p10, %p2540_p9 }
  0x22   : > { %2548 = shalt.err (!%p2545_p11)
}
  0x23   : > { %s2549_s25 = scalar_lea.vmem %s2902_s0, 16  ;;  %s2556_s26 = scalar_lea.vmem %s2902_s0, 32 }
  0x24   : > { %p2550_p12 = scmp.ne.s32.totalorder %s2902_s0, %s2549_s25  ;;  %p2557_p1 = scmp.lt.s32.totalorder %s2902_s0, %s2902_s0 }
  0x25   : > { %p2558_p4 = scmp.lt.s32.totalorder %s2556_s26, %s2549_s25 }
  0x26   : > { %p2552_p13 = pnand %p2550_p12, %p2930_p7 }
  0x27   : > { %p2559_p6 = por %p2558_p4, %p2557_p1 }
  0x28   : > { %p2553_p0 = pneg %p2552_p13 }
  0x2a   : > { %p2560_p8 = pnand %p2559_p6, %p2553_p0 }
  0x2c   : > { %2563 = shalt.err (!%p2560_p8)
}
  0x2d   : > { %2445 = dma.hbm_to_vmem [thread:$0]  (!%p2914_p5), %s3367_s3, 16, %s2902_s0, [#allocation6]  }
  0x2e   : > { %s2564_s23 = scalar_lea.hbm %s3337_s7, 32 }
  0x2f   : > { %p2565_p9 = scmp.ne.s32.totalorder %s3337_s7, %s2564_s23  ;;  %p2571_p12 = scmp.lt.u32.totalorder %s2564_s23, %s3337_s7 }
  0x31   : > { %p2567_p10 = pnand %p2565_p9, %p2930_p7 }
  0x33   : > { %p2568_p11 = pneg %p2567_p10 }
  0x35   : > { %p2573_p13 = pnand %p2571_p12, %p2568_p11 }
  0x37   : > { %2576 = shalt.err (!%p2573_p13)
}
  0x38   : > { %s2577_s0 = scalar_lea.vmem %s2910_s20, 32  ;;  %p2585_p6 = scmp.lt.s32.totalorder %s2910_s20, %s2910_s20 }
  0x39   : > { %p2578_p0 = scmp.ne.s32.totalorder %s2910_s20, %s2577_s0  ;;  %p2586_p8 = scmp.lt.s32.totalorder %s2577_s0, %s2577_s0 }
  0x3b   : > { %p2580_p1 = pnand %p2578_p0, %p2930_p7  ;;  %p2587_p9 = por %p2586_p8, %p2585_p6 }
  0x3d   : > { %p2581_p4 = pneg %p2580_p1 }
  0x3f   : > { %p2588_p10 = pnand %p2587_p9, %p2581_p4 }
  0x41   : > { %2591 = shalt.err (!%p2588_p10)
}
  0x42   : > { %s3354_s16 = smov 16   ;;  %s3356_s29 = smov 1  }
  0x43   : > { %2451 = dma.hbm_to_vmem [thread:$0]  (!%p2914_p5), %s3337_s7, 32, %s2910_s20, [#allocation9], %s3354_s16, %s3354_s16, %s3356_s29  }
  0x44   : > { %s2592_s23 = scalar_lea.hbm %s3339_s9, 32 }
  0x45   : > { %p2593_p11 = scmp.ne.s32.totalorder %s3339_s9, %s2592_s23  ;;  %p2599_p0 = scmp.lt.u32.totalorder %s2592_s23, %s3339_s9 }
  0x47   : > { %p2595_p12 = pnand %p2593_p11, %p2930_p7 }
  0x49   : > { %p2596_p13 = pneg %p2595_p12 }
  0x4b   : > { %p2601_p1 = pnand %p2599_p0, %p2596_p13 }
  0x4d   : > { %2604 = shalt.err (!%p2601_p1)
}
  0x4e   : > { %s2605_s20 = scalar_lea.vmem %s2918_s2, 32  ;;  %p2613_p9 = scmp.lt.s32.totalorder %s2918_s2, %s2918_s2 }
  0x4f   : > { %p2606_p4 = scmp.ne.s32.totalorder %s2918_s2, %s2605_s20  ;;  %p2614_p10 = scmp.lt.s32.totalorder %s2605_s20, %s2605_s20 }
  0x51   : > { %p2608_p6 = pnand %p2606_p4, %p2930_p7  ;;  %p2615_p11 = por %p2614_p10, %p2613_p9 }
  0x53   : > { %p2609_p8 = pneg %p2608_p6 }
  0x55   : > { %p2616_p12 = pnand %p2615_p11, %p2609_p8 }
  0x57   : > { %2619 = shalt.err (!%p2616_p12)
}
  0x58   : > { %2457 = dma.hbm_to_vmem [thread:$0]  (!%p2914_p5), %s3339_s9, 32, %s2918_s2, [#allocation12], %s3354_s16, %s3354_s16, %s3356_s29  }
  0x59   : > { %s3369_s22 = sld [smem:[#allocation21_spill]] }
  0x5f   : > { %s2620_s23 = scalar_lea.hbm %s3369_s22, 16 }
  0x60   : > { %p2621_p13 = scmp.ne.s32.totalorder %s3369_s22, %s2620_s23  ;;  %p2627_p4 = scmp.lt.u32.totalorder %s2620_s23, %s3369_s22 }
  0x62   : > { %p2623_p0 = pnand %p2621_p13, %p2930_p7 }
  0x64   : > { %p2624_p1 = pneg %p2623_p0 }
  0x66   : > { %p2629_p6 = pnand %p2627_p4, %p2624_p1 }
  0x68   : > { %2632 = shalt.err (!%p2629_p6)
}
  0x69   : > { %s2633_s3 = scalar_lea.vmem %s467_s24, 16  ;;  %s2640_s2 = scalar_lea.vmem %s467_s24, 32 }
  0x6a   : > { %p2634_p8 = scmp.ne.s32.totalorder %s467_s24, %s2633_s3  ;;  %p2641_p11 = scmp.lt.s32.totalorder %s467_s24, %s467_s24 }
  0x6b   : > { %p2642_p12 = scmp.lt.s32.totalorder %s2640_s2, %s2633_s3 }
  0x6c   : > { %p2636_p9 = pnand %p2634_p8, %p2930_p7 }
  0x6d   : > { %p2643_p2 = por %p2642_p12, %p2641_p11 }
  0x6e   : > { %p2637_p10 = pneg %p2636_p9 }
  0x70   : > { %p2644_p3 = pnand %p2643_p2, %p2637_p10 }
  0x72   : > { %2647 = shalt.err (!%p2644_p3)
}
  0x73   : > { %2442 = dma.hbm_to_vmem [thread:$0]  (!%p2914_p5), %s3369_s22, 16, %s467_s24, [#allocation4]  }
  0x74   : > { %s2778_s30 = smov [#allocation7]   ;;  %s2779_s25 = smov [#allocation10]  }
  0x75   : > { %s490_s23 = sshll.u32 %s2778_s30, 4  ;;  %s519_s26 = sshll.u32 %s2779_s25, 4  ;;  %s491_s23 = int_to_ptr.vmem [resolvable:$true] %s490_s23  ;;  %s520_s26 = int_to_ptr.vmem [resolvable:$true] %s519_s26 }
  0x76   : > { %s3370_s5 = sld [smem:[#allocation23_spill]] }
  0x7c   : > { %s2648_s16 = scalar_lea.hbm %s3370_s5, 32 }
  0x7d   : > { %p2649_p2 = scmp.ne.s32.totalorder %s3370_s5, %s2648_s16  ;;  %p2655_p0 = scmp.lt.u32.totalorder %s2648_s16, %s3370_s5 }
  0x7f   : > { %p2651_p3 = pnand %p2649_p2, %p2930_p7 }
  0x81   : > { %p2652_p13 = pneg %p2651_p3 }
  0x83   : > { %p2657_p1 = pnand %p2655_p0, %p2652_p13 }
  0x85   : > { %2660 = shalt.err (!%p2657_p1)
}
  0x86   : > { %s2661_s24 = scalar_lea.vmem %s491_s23, 32  ;;  %p2669_p9 = scmp.lt.s32.totalorder %s491_s23, %s491_s23 }
  0x87   : > { %p2662_p4 = scmp.ne.s32.totalorder %s491_s23, %s2661_s24  ;;  %p2670_p10 = scmp.lt.s32.totalorder %s2661_s24, %s2661_s24 }
  0x89   : > { %p2664_p6 = pnand %p2662_p4, %p2930_p7  ;;  %p2671_p11 = por %p2670_p10, %p2669_p9 }
  0x8b   : > { %p2665_p8 = pneg %p2664_p6 }
  0x8d   : > { %p2672_p12 = pnand %p2671_p11, %p2665_p8 }
  0x8f   : > { %2675 = shalt.err (!%p2672_p12)
}
  0x90   : > { %s3371_s28 = smov 1   ;;  %s3372_s30 = smov 16  }
  0x91   : > { %2448 = dma.hbm_to_vmem [thread:$0]  (!%p2914_p5), %s3370_s5, 32, %s491_s23, [#allocation6], %s3372_s30, %s3372_s30, %s3371_s28  }
  0x92   : > { %s2676_s20 = scalar_lea.hbm %s3338_s8, 32 }
  0x93   : > { %p2677_p2 = scmp.ne.s32.totalorder %s3338_s8, %s2676_s20  ;;  %p2683_p0 = scmp.lt.u32.totalorder %s2676_s20, %s3338_s8 }
  0x95   : > { %p2679_p3 = pnand %p2677_p2, %p2930_p7 }
  0x97   : > { %p2680_p13 = pneg %p2679_p3 }
  0x99   : > { %p2685_p1 = pnand %p2683_p0, %p2680_p13 }
  0x9b   : > { %2688 = shalt.err (!%p2685_p1)
}
  0x9c   : > { %s2689_s29 = scalar_lea.vmem %s520_s26, 32  ;;  %p2697_p9 = scmp.lt.s32.totalorder %s520_s26, %s520_s26 }
  0x9d   : > { %p2690_p4 = scmp.ne.s32.totalorder %s520_s26, %s2689_s29  ;;  %p2698_p10 = scmp.lt.s32.totalorder %s2689_s29, %s2689_s29 }
  0x9f   : > { %p2692_p6 = pnand %p2690_p4, %p2930_p7  ;;  %p2699_p11 = por %p2698_p10, %p2697_p9 }
  0xa1   : > { %p2693_p8 = pneg %p2692_p6 }
  0xa3   : > { %p2700_p12 = pnand %p2699_p11, %p2693_p8 }
  0xa5   : > { %2703 = shalt.err (!%p2700_p12)
}
  0xa6   : > { %2454 = dma.hbm_to_vmem [thread:$0]  (!%p2914_p5), %s3338_s8, 32, %s520_s26, [#allocation9], %s3372_s30, %s3372_s30, %s3371_s28  }
  0xa7   : > { %s2780_s25 = smov [#allocation13]   ;;  %s2704_s2 = scalar_lea.hbm %s3341_s11, 32 }
  0xa8   : > { %s548_s0 = sshll.u32 %s2780_s25, 4  ;;  %p2705_p2 = scmp.ne.s32.totalorder %s3341_s11, %s2704_s2  ;;  %s549_s0 = int_to_ptr.vmem [resolvable:$true] %s548_s0 }
  0xa9   : > { %p2711_p0 = scmp.lt.u32.totalorder %s2704_s2, %s3341_s11 }
  0xaa   : > { %p2707_p3 = pnand %p2705_p2, %p2930_p7 }
  0xac   : > { %p2708_p13 = pneg %p2707_p3 }
  0xae   : > { %p2713_p1 = pnand %p2711_p0, %p2708_p13 }
  0xb0   : > { %2716 = shalt.err (!%p2713_p1)
}
  0xb1   : > { %s2717_s26 = scalar_lea.vmem %s549_s0, 32  ;;  %p2725_p9 = scmp.lt.s32.totalorder %s549_s0, %s549_s0 }
  0xb2   : > { %p2718_p4 = scmp.ne.s32.totalorder %s549_s0, %s2717_s26  ;;  %p2726_p10 = scmp.lt.s32.totalorder %s2717_s26, %s2717_s26 }
  0xb4   : > { %p2720_p6 = pnand %p2718_p4, %p2930_p7  ;;  %p2727_p11 = por %p2726_p10, %p2725_p9 }
  0xb6   : > { %p2721_p8 = pneg %p2720_p6 }
  0xb8   : > { %p2728_p12 = pnand %p2727_p11, %p2721_p8 }
  0xba   : > { %2731 = shalt.err (!%p2728_p12)
}
  0xbb   : > { %2460 = dma.hbm_to_vmem [thread:$0]  (!%p2914_p5), %s3341_s11, 32, %s549_s0, [#allocation12], %s3372_s30, %s3372_s30, %s3371_s28  }
  0xbc   : > { %p3373_p2 = scmp.ne.s32.totalorder %s3365_s17, 0 }
  0xbd   : > { %p3374_p7 = scmp.eq.s32.totalorder (!%p3373_p2), %s2897_s19, 0 }
  0xbe   : > { %595 = sbr.rel (%p3373_p2) target bundleno = 3424 (0xd60), region = 92 }
  0xc5   : > { %2745 = dma.done.wait (%p3374_p7), [#allocation4], 16   ;;  %p3375_p3 = pmov %p3374_p7 }
  0xc7   : > { %2747 = vsyncadd (%p3375_p3), [#allocation4], 4294967280  ;;  %p3376_p13 = pmov %p3375_p3 }
  0xc8   : > { %p3377_p0 = pmov %p3375_p3 }
  0xc9   : > { %2749 = dma.done.wait (%p3376_p13), [#allocation6], 48  }
  0xca   : > { %2751 = vsyncadd (%p3377_p0), [#allocation6], 4294967248  ;;  %p3378_p1 = pmov %p3377_p0 }
  0xcb   : > { %p3379_p5 = pmov %p3377_p0 }
  0xcc   : > { %2753 = dma.done.wait (%p3378_p1), [#allocation9], 64  }
  0xcd   : > { %2755 = vsyncadd (%p3379_p5), [#allocation9], 4294967232  ;;  %p3380_p4 = pmov %p3377_p0 }
  0xce   : > { %p3381_p6 = pmov %p3377_p0 }
  0xcf   : > { %2757 = dma.done.wait (%p3380_p4), [#allocation12], 64  }
  0xd0   : > { %2759 = vsyncadd (%p3381_p6), [#allocation12], 4294967232  ;;  %p673_p8 = scmp.lt.s32.totalorder %s2897_s19, 1  ;;  %s3382_s28 = sld [smem:[#allocation20_spill]]  ;;  %vm686_vm0 = vcmask 261120  }
  0xd1   : > { %s3383_s0 = sld [smem:[#allocation19_spill]]  ;;  %v2221_v13 = vld [vmem:[#allocation3] ss:$0 sm:$0xff]  ;;  %v2222_v15 = vld [vmem:[#allocation5] ss:$0 sm:$0xff]  ;;  %s3126_s24 = smov 0  }
  0xd2   : > { %s3388_s19 = smov (!%p673_p8, %s2897_s19), 1 }
  0xd3   : > { %s2220_s17 = sshll.u32 %s3388_s19, 3  ;;  %s682_s27 = scalar_lea.vmem %s3348_s18, %s3388_s19 }
  0xd6   : > { %s679_s30 = scalar_lea.vmem %s3382_s28, %s3388_s19 }
  0xd7   : > { %s676_s20 = scalar_lea.vmem %s3383_s0, %s2220_s17  ;;  %v3120_v2 = vld [vmem:[%s679_s30] ss:$0 sm:$0xff] }
  0xd8   : > { %v683_v1 = vld [vmem:[%s676_s20] sm:$0xff] }
  0xd9   : > { %v687_v3 = vsel %vm686_vm0, %v683_v1, 0.0 }
  0xda   : > { %688 = vadd.xlane.f32.xlu0 %v687_v3 }
 0x167   : > { %v689_v4 = vpop.xlane.xlu0 %688 }
 0x168   : > { %v691_v5 = vmul.f32 0.03125, %v689_v4 }
 0x16a   : > { %v692_v6 = vsub.f32 %v683_v1, %v691_v5 }
 0x16c   : > { %v693_v7 = vmul.f32 %v692_v6, %v692_v6 }
 0x16e   : > { %v694_v8 = vsel %vm686_vm0, %v693_v7, 0.0 }
 0x16f   : > { %695 = vadd.xlane.f32.xlu0 %v694_v8 }
 0x1fc   : > { %v696_v9 = vpop.xlane.xlu0 %695 }
 0x1fd   : > { %v697_v10 = vmul.f32 0.03125, %v696_v9 }
 0x1ff   : > { %v698_v11 = vadd.f32 1e-05, %v697_v10 }
 0x201   : > { %2520 = vrsqrt.f32 %v698_v11 }
 0x20b   : > { %v2521_v12 = vpop.eup %2520 }
 0x20c   : > { %v700_v14 = vmul.f32 %v2521_v12, %v692_v6 }
 0x20e   : > { %v707_v16 = vmul.f32 %v2221_v13, %v700_v14 }
 0x210   : > { %v714_v17 = vadd.f32 %v2222_v15, %v707_v16  }
 0x211 LB: >> { %v2781_v18 = vmov 0.0|0.0   ;;  %vm2782_vm1 = vmmov 0   ;;  %v2783_v19 = vmov 0.0   ;;  %s3138_s29 = sshll.u32 %s2770_s24, 5  ;;  %s729_s17 = scalar_lea.vmem [#allocation7], %s2770_s24  ;;  %v818_v33 = vlaneseq  ;;  %s2770_s24 = sphi %s3126_s24, %s721_s24   ;;  %v2766_v17 = vphi %v714_v17, %v3384_v17  }
 0x212   : >> { %2375 = vmatprep.subr.bf16.mxu1 %v2781_v18  ;;  %2300 = vmatprep.mubr.msk.f32.mxu1 %vm2782_vm1, %v2783_v19  ;;  %s724_s23 = scalar_lea.vmem %s3334_s4, %s3138_s29  ;;  %v2224_v26 = vld [vmem:[%s729_s17] ss:$0 sm:$0xff]  ;;  %s2784_s21 = smov 112   ;;  %v2786_v31 = vmov 1983009808   ;;  %vm1174_vm2 = vcmask 130048  }
 0x213   : >> { %2313 = vmatprep.subr.mxu0 %v2783_v19  ;;  %2315 = vmatprep.mubr.msk.f32.mxu0 %vm2782_vm1, %v2783_v19  ;;  %v725_v20 = vld [vmem:[%s724_s23] sm:$0xff]  ;;  %v726_v21 = vld [vmem:[%s724_s23 + $0x8] sm:$0xff]  ;;  %v727_v22 = vld [vmem:[%s724_s23 + $0x10] sm:$0xff]  ;;  %s2785_s1 = smov 96   ;;  %v816_v32 = vunpack.c.l.s4 %v2786_v31  ;;  %v819_v35 = vshrl.u32 %v818_v33, 7  ;;  %vm1337_vm3 = vcmask 64512   ;;  %s1627_s25 = scalar_lea.vmem %s3336_s6, %s3138_s29 }
 0x214   : >> { %v2376_v23 = vpack.c.bf16 %v726_v21, %v725_v20  ;;  %v728_v24 = vld [vmem:[%s724_s23 + $0x18] sm:$0xff]  ;;  %v2787_v39 = vmov 1934713408   ;;  %s2788_s28 = smov 64   ;;  %s2789_s0 = smov 16   ;;  %vm1858_vm4 = vcmask 523264  }
 0x215   : >> { %v2379_v25 = vpack.c.bf16 %v728_v24, %v727_v22  ;;  %v817_v34 = vunpack.c.0.s8 %v816_v32  ;;  %v847_v40 = vunpack.c.l.s4 %v2787_v39  ;;  %s1632_s20 = scalar_lea.vmem [#allocation8], %s2770_s24  ;;  %s1745_s26 = scalar_lea.vmem %s3340_s10, %s3138_s29 }
 0x216   : >> { %2377 = vmatpush3.bf16.msra.mxu1 %v2376_v23  ;;  %s1714_s5 = scalar_lea.vmem [#allocation10], %s2770_s24  ;;  %s1716_s29 = scalar_lea.vmem [#allocation11], %s2770_s24 }
 0x217   : >> { %2378 = vmatprep.subr.bf16.mxu1 %v2781_v18  ;;  %v3165_v38 = vsub.s32 %v817_v34, %v819_v35  ;;  %v848_v42 = vunpack.c.0.s8 %v847_v40  ;;  %s2247_s23 = sshll.u32 %s2770_s24, 6  ;;  %s1933_s3 = scalar_lea.vmem %s3344_s14, %s2770_s24 }
 0x219   : >> { %v3173_v49 = vsub.s32 %v848_v42, %v819_v35 }
 0x21a   : >> { %2380 = vmatpush3.bf16.msra.mxu1 %v2379_v25 }
 0x21b   : >> { %2303 = vmatprep.subr.mxu1 %v2783_v19 }
 0x21d   : >> { %2301 = vmatmul.mubr.msk.f32.vlgmr.msra.gmra.mrb[0].mxu1 %vm686_vm0, %v2766_v17 }
 0x21e   : >> { %2305 = vmatprep.mubr.msk.f32.mxu1 %vm2782_vm1, %v2783_v19 }
 0x2f0   : >> { %v806_v27 = vpop.f32.mrb[0].mxu1 }
 0x2f1   : >> { %v3154_v28 = vadd.f32 %v2224_v26, %v806_v27  ;;  %v2302_v29 = vpop.f32.mrb[1].mxu1 }
 0x2f3   : >> { %811 = vrot.lane.b32.xlu0 %v3154_v28, %s2784_s21  ;;  %v814_v37 = vcombine.high %v3154_v28, %v2783_v19  ;;  %v821_v45 = vrot.slane %v3154_v28, %v3165_v38 }
 0x2f5   : >> { %v828_v43 = vrot.slane %v814_v37, %v3165_v38 }
 0x2f7   : >> { %930 = vrot.lane.b32.xlu0 %v3154_v28, %s2785_s1 }
 0x365   : >> { %v3158_v30 = vpop.permute.xlu0 %811 }
 0x366   : >> { %932 = vrot.lane.b32.xlu1 %v3158_v30, %s2785_s1  ;;  %v829_v36 = vcombine.high %v3158_v30, %v2783_v19  ;;  %v836_v44 = vrot.slane %v3158_v30, %v3165_v38  ;;  %s1841_s1 = scalar_lea.vmem %s3342_s12, %s2247_s23 }
 0x368   : >> { %v843_v41 = vrot.slane %v829_v36, %v3165_v38  ;;  %v844_v50 = vcombine.low %v821_v45, %v836_v44  ;;  %v845_v51 = vcombine.high %v821_v45, %v836_v44 }
 0x369   : >> { %v931_v48 = vpop.permute.xlu0 %930 }
 0x36a   : >> { %v860_v46 = vcombine.low %v828_v43, %v843_v41  ;;  %v861_v47 = vcombine.high %v828_v43, %v843_v41  ;;  %v936_v52 = vcombine.high %v931_v48, %v2783_v19  ;;  %v943_v56 = vrot.slane %v931_v48, %v3165_v38 }
 0x36b   : >> { %v852_v59 = vrot.slane %v844_v50, %v3173_v49  ;;  %v859_v60 = vrot.slane %v845_v51, %v3173_v49 }
 0x36c   : >> { %v868_v53 = vrot.slane %v860_v46, %v3173_v49  ;;  %v875_v54 = vrot.slane %v861_v47, %v3173_v49  ;;  %v950_v61 = vrot.slane %v936_v52, %v3165_v38 }
 0x36d   : >> { %v880_v8 = vcombine.low %v852_v59, %v859_v60  ;;  %v2226_v9 = vcombine.high %v852_v59, %v859_v60 }
 0x36e   : >> { %v896_v1 = vcombine.low %v868_v53, %v875_v54  ;;  %v2227_v3 = vcombine.high %v868_v53, %v875_v54 }
 0x36f   : >> { %v887_v23 = vrot.slane %v880_v8, %v3165_v38  ;;  %v895_v24 = vrot.slane %v2226_v9, %v3165_v38 }
 0x370   : >> { %v903_v14 = vrot.slane %v896_v1, %v3165_v38  ;;  %v911_v15 = vrot.slane %v2227_v3, %v3165_v38 }
 0x371   : >> { %v912_v32 = vcombine.low %v887_v23, %v895_v24 }
 0x372   : >> { %v920_v29 = vcombine.low %v903_v14, %v911_v15 }
 0x373   : >> { %v919_v37 = vrot.slane %v912_v32, %v3173_v49 }
 0x374   : >> { %v927_v35 = vrot.slane %v920_v29, %v3173_v49 }
 0x376   : >> { %v928_v39 = vcombine.low %v919_v37, %v927_v35  ;;  %v929_v41 = vcombine.high %v919_v37, %v927_v35 }
 0x3d8   : >> { %v933_v55 = vpop.permute.xlu1 %932 }
 0x3d9   : >> { %v951_v57 = vcombine.high %v933_v55, %v2783_v19  ;;  %v958_v58 = vrot.slane %v933_v55, %v3165_v38 }
 0x3db   : >> { %v965_v62 = vrot.slane %v951_v57, %v3165_v38  ;;  %v966_v63 = vcombine.low %v943_v56, %v958_v58  ;;  %v967_v0 = vcombine.high %v943_v56, %v958_v58 }
 0x3dd   : >> { %v974_v4 = vrot.slane %v966_v63, %v3173_v49  ;;  %v981_v5 = vrot.slane %v967_v0, %v3173_v49  ;;  %v982_v6 = vcombine.low %v950_v61, %v965_v62  ;;  %v983_v7 = vcombine.high %v950_v61, %v965_v62 }
 0x3df   : >> { %v990_v10 = vrot.slane %v982_v6, %v3173_v49  ;;  %v997_v11 = vrot.slane %v983_v7, %v3173_v49  ;;  %v1002_v12 = vcombine.low %v974_v4, %v981_v5  ;;  %v2228_v13 = vcombine.high %v974_v4, %v981_v5 }
 0x3e1   : >> { %v1009_v16 = vrot.slane %v1002_v12, %v3165_v38  ;;  %v1017_v20 = vrot.slane %v2228_v13, %v3165_v38  ;;  %v1018_v21 = vcombine.low %v990_v10, %v997_v11  ;;  %v2229_v22 = vcombine.high %v990_v10, %v997_v11 }
 0x3e3   : >> { %v1025_v25 = vrot.slane %v1018_v21, %v3165_v38  ;;  %v1033_v26 = vrot.slane %v2229_v22, %v3165_v38  ;;  %v1034_v27 = vcombine.low %v1009_v16, %v1017_v20 }
 0x3e5   : >> { %v1042_v31 = vcombine.low %v1025_v25, %v1033_v26  ;;  %v1041_v33 = vrot.slane %v1034_v27, %v3173_v49 }
 0x3e7   : >> { %v1049_v34 = vrot.slane %v1042_v31, %v3173_v49 }
 0x3e9   : >> { %v1050_v36 = vcombine.low %v1041_v33, %v1049_v34  ;;  %v1051_v40 = vcombine.high %v1041_v33, %v1049_v34 }
 0x3eb   : >> { %2304 = vmatpush3.xpose.msk.msra.mxu1 %vm1174_vm2, %v1050_v36 }
 0x3ec   : >> { %2308 = vmatprep.subr.mxu1 %v2783_v19 }
 0x3ee   : >> { %2306 = vmatmul.mubr.msk.f32.vlgmr.msra.gmra.mrb[2].mxu1 %vm1174_vm2, %v928_v39 }
 0x3ef   : >> { %2309 = vmatpush3.xpose.msk.msra.mxu1 %vm1174_vm2, %v1051_v40  ;;  %2310 = vmatprep.mubr.msk.f32.mxu1 %vm2782_vm1, %v2783_v19  ;;  %v1628_v40 = vld [vmem:[%s1627_s25] sm:$0xff] }
 0x3f0   : >> { %2318 = vmatprep.subr.mxu1 %v2783_v19 }
 0x3f2   : >> { %2311 = vmatmul.mubr.msk.f32.vlgmr.msra.gmra.mrb[4].mxu1 %vm1174_vm2, %v929_v41  ;;  %v1629_v41 = vld [vmem:[%s1627_s25 + $0x8] sm:$0xff] }
 0x3f3   : >> { %2320 = vmatprep.mubr.msk.f32.mxu1 %vm2782_vm1, %v2783_v19 }
 0x4c1   : >> { %v1247_v42 = vpop.f32.mrb[2].mxu1 }
 0x4c2   : >> { %v1327_v43 = vmul.f32 0.25, %v1247_v42  ;;  %v2307_v44 = vpop.f32.mrb[3].mxu1  ;;  %v1630_v42 = vld [vmem:[%s1627_s25 + $0x10] sm:$0xff] }
 0x4c3   : >> { %v1631_v44 = vld [vmem:[%s1627_s25 + $0x18] sm:$0xff]  ;;  %s1850_s25 = scalar_lea.vmem %s3343_s13, %s2770_s24 }
 0x4c4   : >> { %v1335_v45 = vadd.f32 %v3120_v2, %v1327_v43  ;;  %v2382_v43 = vpack.c.bf16 %v1629_v41, %v1628_v40  ;;  %v2244_v41 = vld [vmem:[%s1716_s29] ss:$0 sm:$0xff] }
 0x4c5   : >> { %v1323_v46 = vpop.f32.mrb[4].mxu1 }
 0x4c6   : >> { %v1328_v47 = vmul.f32 0.25, %v1323_v46  ;;  %v2312_v48 = vpop.f32.mrb[5].mxu1  ;;  %v1338_v50 = vsel %vm1337_vm3, %v1335_v45, -inf }
 0x4c7   : >> { %1339 = vmax.xlane.f32.xlu1 %v1338_v50 }
 0x4c8   : >> { %v1336_v51 = vadd.f32 %v3120_v2, %v1328_v47 }
 0x4ca   : >> { %v1341_v52 = vsel %vm1337_vm3, %v1336_v51, -inf }
 0x4cb   : >> { %1342 = vmax.xlane.f32.xlu0 %v1341_v52 }
 0x554   : >> { %v1340_v53 = vpop.xlane.xlu1 %1339 }
 0x555   : >> { %v1344_v54 = vsub.f32 %v1335_v45, %v1340_v53  ;;  %v2385_v45 = vpack.c.bf16 %v1631_v44, %v1630_v42  ;;  %v1842_v44 = vld [vmem:[%s1841_s1] sm:$0xff] }
 0x557   : >> { %v1346_v55 = vmul.f32 1.442695, %v1344_v54 }
 0x558   : >> { %v1343_v56 = vpop.xlane.xlu0 %1342 }
 0x559   : >> { %2522 = vpow2.f32 %v1346_v55  ;;  %v1345_v57 = vsub.f32 %v1336_v51, %v1343_v56 }
 0x55b   : >> { %v1348_v58 = vmul.f32 1.442695, %v1345_v57 }
 0x55d   : >> { %2524 = vpow2.f32 %v1348_v58 }
 0x563   : >> { %v2523_v59 = vpop.eup %2522 }
 0x564   : >> { %v1350_v60 = vsel %vm1337_vm3, %v2523_v59, 0.0 }
 0x565   : >> { %1351 = vadd.xlane.f32.xlu0 %v1350_v60 }
 0x567   : >> { %v2525_v61 = vpop.eup %2524 }
 0x568   : >> { %v1353_v62 = vsel %vm1337_vm3, %v2525_v61, 0.0 }
 0x569   : >> { %1354 = vadd.xlane.f32.xlu1 %v1353_v62 }
 0x57a   : >> { %1054 = vrot.lane.b32.xlu1 %v3158_v30, %s2788_s28 }
 0x57b   : >> { %1052 = vrot.lane.b32.xlu0 %v3154_v28, %s2788_s28  ;;  %s1750_s28 = scalar_lea.vmem [#allocation13], %s2770_s24 }
 0x5f2   : >> { %v1352_v63 = vpop.xlane.xlu0 %1351 }
 0x5f3   : >> { %2526 = vrcp.f32 %v1352_v63 }
 0x5f6   : >> { %v1355_v0 = vpop.xlane.xlu1 %1354  ;;  %v1053_v1 = vpop.permute.xlu0 %1052 }
 0x5f7   : >> { %v1058_v3 = vcombine.high %v1053_v1, %v2783_v19  ;;  %v1065_v5 = vrot.slane %v1053_v1, %v3165_v38  ;;  %2528 = vrcp.f32 %v1355_v0 }
 0x5f9   : >> { %v1072_v8 = vrot.slane %v1058_v3, %v3165_v38 }
 0x5fa   : >> { %v1055_v4 = vpop.permute.xlu1 %1054 }
 0x5fb   : >> { %v1073_v6 = vcombine.high %v1055_v4, %v2783_v19  ;;  %v1080_v7 = vrot.slane %v1055_v4, %v3165_v38 }
 0x5fd   : >> { %v1087_v9 = vrot.slane %v1073_v6, %v3165_v38  ;;  %v1088_v30 = vcombine.low %v1065_v5, %v1080_v7  ;;  %v1089_v10 = vcombine.high %v1065_v5, %v1080_v7  ;;  %v2527_v29 = vpop.eup %2526 }
 0x5fe   : >> { %v1358_v39 = vmul.f32 %v2527_v29, %v2523_v59  ;;  %v1747_v29 = vld [vmem:[%s1745_s26 + $0x8] sm:$0xff] }
 0x5ff   : >> { %v1096_v28 = vrot.slane %v1088_v30, %v3173_v49  ;;  %v1103_v11 = vrot.slane %v1089_v10, %v3173_v49  ;;  %v1104_v12 = vcombine.low %v1072_v8, %v1087_v9  ;;  %v1105_v13 = vcombine.high %v1072_v8, %v1087_v9 }
 0x601   : >> { %v1112_v14 = vrot.slane %v1104_v12, %v3173_v49  ;;  %v1119_v15 = vrot.slane %v1105_v13, %v3173_v49  ;;  %v1124_v16 = vcombine.low %v1096_v28, %v1103_v11  ;;  %v2230_v20 = vcombine.high %v1096_v28, %v1103_v11  ;;  %v2529_v32 = vpop.eup %2528 }
 0x602   : >> { %v1359_v37 = vmul.f32 %v2529_v32, %v2525_v61  ;;  %v1749_v32 = vld [vmem:[%s1745_s26 + $0x18] sm:$0xff] }
 0x603   : >> { %v1131_v21 = vrot.slane %v1124_v16, %v3165_v38  ;;  %v1139_v22 = vrot.slane %v2230_v20, %v3165_v38  ;;  %v1140_v23 = vcombine.low %v1112_v14, %v1119_v15  ;;  %v2231_v24 = vcombine.high %v1112_v14, %v1119_v15 }
 0x605   : >> { %v1147_v25 = vrot.slane %v1140_v23, %v3165_v38  ;;  %v1155_v26 = vrot.slane %v2231_v24, %v3165_v38  ;;  %v1156_v27 = vcombine.low %v1131_v21, %v1139_v22 }
 0x607   : >> { %v1164_v31 = vcombine.low %v1147_v25, %v1155_v26  ;;  %v1163_v33 = vrot.slane %v1156_v27, %v3173_v49 }
 0x609   : >> { %v1171_v34 = vrot.slane %v1164_v31, %v3173_v49  ;;  %v1748_v31 = vld [vmem:[%s1745_s26 + $0x10] sm:$0xff] }
 0x60b   : >> { %v1172_v35 = vcombine.low %v1163_v33, %v1171_v34  ;;  %v1173_v36 = vcombine.high %v1163_v33, %v1171_v34  ;;  %v2391_v33 = vpack.c.bf16 %v1749_v32, %v1748_v31 }
 0x60d   : >> { %2314 = vmatpush3.msra.mxu0 %v1172_v35  ;;  %2319 = vmatpush3.msra.mxu1 %v1173_v36 }
 0x60e   : >> { %2316 = vmatmul.mubr.msk.f32.vlgmr.msra.gmra.mrb[0].mxu0 %vm1337_vm3, %v1358_v39  ;;  %2321 = vmatmul.mubr.msk.f32.vlgmr.msra.gmra.mrb[6].mxu1 %vm1337_vm3, %v1359_v37  ;;  %v2243_v39 = vld [vmem:[%s1714_s5] ss:$0 sm:$0xff]  ;;  %s1935_s5 = scalar_lea.vmem %s3345_s15, %s2770_s24  ;;  %s721_s24 = sadd.s32 1, %s2770_s24  }
 0x60f   : >> { %2381 = vmatprep.subr.bf16.mxu0 %v2781_v18  ;;  %2331 = vmatprep.mubr.msk.f32.mxu0 %vm2782_vm1, %v2783_v19  ;;  %p718_p9 = scmp.ge.s32.totalorder %s721_s24, 2  }
 0x610   : >> { %2387 = vmatprep.subr.bf16.mxu1 %v2781_v18  ;;  %2342 = vmatprep.mubr.msk.f32.mxu1 %vm2782_vm1, %v2783_v19  ;;  %s3385_s17 = sld [smem:[#allocation24_spill]] (%p718_p9)  ;;  %vm2791_vm5 = vmmov (%p718_p9), 0   ;;  %v2792_v2 = vmov (%p718_p9), 0.0   ;;  %vm2050_vm6 = vcmask (%p718_p9), 0  }
 0x611   : >> { %2383 = vmatpush3.bf16.msra.mxu0 %v2382_v43 }
 0x612   : >> { %2384 = vmatprep.subr.bf16.mxu0 %v2781_v18 }
 0x615   : >> { %2386 = vmatpush3.bf16.msra.mxu0 %v2385_v45  ;;  %v1843_v45 = vld [vmem:[%s1841_s1 + $0x8] sm:$0xff] }
 0x616   : >> { %2393 = vmatprep.subr.bf16.mxu0 %v2781_v18  ;;  %v1975_v31 = vld [vmem:[%s3385_s17 + $0x18] sm:$0xff] (%p718_p9) }
 0x6e1   : >> { %v1429_v46 = vpop.f32.mrb[0].mxu0  ;;  %v1502_v47 = vpop.f32.mrb[6].mxu1 }
 0x6e2   : >> { %v1506_v48 = vcombine.high %v1429_v46, %v2783_v19  ;;  %v1513_v50 = vrot.slane %v1429_v46, %v3165_v38  ;;  %v1521_v51 = vcombine.high %v1502_v47, %v2783_v19  ;;  %v1528_v52 = vrot.slane %v1502_v47, %v3165_v38  ;;  %v2317_v53 = vpop.f32.mrb[1].mxu0  ;;  %v2322_v54 = vpop.f32.mrb[7].mxu1  ;;  %v1844_v47 = vld [vmem:[%s1841_s1 + $0x10] sm:$0xff] }
 0x6e3   : >> { %v2394_v46 = vpack.c.bf16 %v1843_v45, %v1842_v44  ;;  %v1848_v54 = vld [vmem:[%s1841_s1 + $0x30] sm:$0xff] }
 0x6e4   : >> { %v1520_v55 = vrot.slane %v1506_v48, %v3165_v38  ;;  %v1535_v56 = vrot.slane %v1521_v51, %v3165_v38  ;;  %v1536_v57 = vcombine.low %v1513_v50, %v1528_v52  ;;  %v1537_v58 = vcombine.high %v1513_v50, %v1528_v52  ;;  %v1845_v48 = vld [vmem:[%s1841_s1 + $0x18] sm:$0xff]  ;;  %v1846_v51 = vld [vmem:[%s1841_s1 + $0x20] sm:$0xff]  ;;  %v1847_v52 = vld [vmem:[%s1841_s1 + $0x28] sm:$0xff] }
 0x6e5   : >> { %v2397_v50 = vpack.c.bf16 %v1845_v48, %v1844_v47  ;;  %v2400_v53 = vpack.c.bf16 %v1847_v52, %v1846_v51 }
 0x6e6   : >> { %v1544_v59 = vrot.slane %v1536_v57, %v3173_v49  ;;  %v1551_v60 = vrot.slane %v1537_v58, %v3173_v49  ;;  %v1552_v61 = vcombine.low %v1520_v55, %v1535_v56  ;;  %v1553_v62 = vcombine.high %v1520_v55, %v1535_v56  ;;  %v1849_v55 = vld [vmem:[%s1841_s1 + $0x38] sm:$0xff]  ;;  %v2245_v57 = vld [vmem:[%s1750_s28] ss:$0 sm:$0xff] }
 0x6e7   : >> { %v2403_v56 = vpack.c.bf16 %v1849_v55, %v1848_v54 }
 0x6e8   : >> { %v1560_v63 = vrot.slane %v1552_v61, %v3173_v49  ;;  %v1567_v0 = vrot.slane %v1553_v62, %v3173_v49  ;;  %v1572_v1 = vcombine.low %v1544_v59, %v1551_v60  ;;  %v2239_v3 = vcombine.high %v1544_v59, %v1551_v60 }
 0x6ea   : >> { %v1579_v4 = vrot.slane %v1572_v1, %v3165_v38  ;;  %v1587_v5 = vrot.slane %v2239_v3, %v3165_v38  ;;  %v1588_v6 = vcombine.low %v1560_v63, %v1567_v0  ;;  %v2240_v7 = vcombine.high %v1560_v63, %v1567_v0 }
 0x6ec   : >> { %v1595_v8 = vrot.slane %v1588_v6, %v3165_v38  ;;  %v1603_v9 = vrot.slane %v2240_v7, %v3165_v38  ;;  %v1604_v30 = vcombine.low %v1579_v4, %v1587_v5  ;;  %v2241_v38 = vld [vmem:[%s1632_s20] ss:$0 sm:$0xff] }
 0x6ee   : >> { %v1612_v10 = vcombine.low %v1595_v8, %v1603_v9  ;;  %v1611_v28 = vrot.slane %v1604_v30, %v3173_v49 }
 0x6f0   : >> { %v1619_v11 = vrot.slane %v1612_v10, %v3173_v49 }
 0x6f2   : >> { %v1621_v12 = vcombine.high %v1611_v28, %v1619_v11  ;;  %v1620_v13 = vcombine.low %v1611_v28, %v1619_v11 }
 0x6f4   : >> { %1623 = vrot.lane.b32.xlu1 %v1621_v12, %s2789_s0 }
 0x766   : >> { %v1624_v14 = vpop.permute.xlu1 %1623 }
 0x767   : >> { %v1626_v15 = vsel %vm1174_vm2, %v1620_v13, %v1624_v14 }
 0x768   : >> { %2332 = vmatmul.mubr.msk.f32.vlgmr.msra.gmra.mrb[2].mxu0 %vm686_vm0, %v1626_v15 }
 0x769   : >> { %2361 = vmatprep.mubr.msk.f32.mxu0 %vm2782_vm1, %v2783_v19  ;;  %v1746_v19 = vld [vmem:[%s1745_s26] sm:$0xff]  ;;  %2395 = vmatpush3.bf16.msra.mxu0 %v2394_v46 }
 0x76a   : >> { %2396 = vmatprep.subr.bf16.mxu0 %v2781_v18 }
 0x76d   : >> { %2398 = vmatpush3.bf16.msra.mxu0 %v2397_v50 }
 0x76e   : >> { %2399 = vmatprep.subr.bf16.mxu0 %v2781_v18 }
 0x771   : >> { %2401 = vmatpush3.bf16.msra.mxu0 %v2400_v53 }
 0x772   : >> { %2402 = vmatprep.subr.bf16.mxu0 %v2781_v18 }
 0x775   : >> { %2404 = vmatpush3.bf16.msra.mxu0 %v2403_v56 }
 0x83b   : >> { %v1709_v16 = vpop.f32.mrb[2].mxu0 }
 0x83c   : >> { %v1710_v20 = vadd.f32 %v2241_v38, %v1709_v16  ;;  %v2333_v21 = vpop.f32.mrb[3].mxu0 }
 0x83d   : >> { %v2250_v21 = vld [vmem:[%s1933_s3] ss:$0 sm:$0xff] }
 0x83e   : >> { %v1713_v49 = vadd.f32 %v2766_v17, %v1710_v20  ;;  %v2388_v17 = vpack.c.bf16 %v1747_v29, %v1746_v19  ;;  %v2790_v19 = vmov (%p718_p9), 0.0|0.0  }
 0x83f   : > { %2405 = vmatprep.subr.bf16.mxu0 (%p718_p9), %v2790_v19 }
 0x840   : >> { %v1718_v22 = vsel %vm686_vm0, %v1713_v49, 0.0  ;;  %2389 = vmatpush3.bf16.msra.mxu1 %v2388_v17 }
 0x841   : >> { %1719 = vadd.xlane.f32.xlu0 %v1718_v22  ;;  %2390 = vmatprep.subr.bf16.mxu1 %v2781_v18  ;;  %v2248_v18 = vld [vmem:[%s1850_s25] ss:$0 sm:$0xff] }
 0x842   : >> { %v2251_v22 = vld [vmem:[%s1935_s5] ss:$0 sm:$0xff] }
 0x844   : >> { %2392 = vmatpush3.bf16.msra.mxu1 %v2391_v33 }
 0x8ce   : >> { %v1720_v23 = vpop.xlane.xlu0 %1719 }
 0x8cf   : >> { %v1721_v24 = vmul.f32 0.03125, %v1720_v23 }
 0x8d1   : >> { %v1722_v25 = vsub.f32 %v1713_v49, %v1721_v24 }
 0x8d3   : >> { %v1723_v26 = vmul.f32 %v1722_v25, %v1722_v25 }
 0x8d5   : >> { %v1724_v27 = vsel %vm686_vm0, %v1723_v26, 0.0  ;;  %v1973_v26 = vld [vmem:[%s3385_s17 + $0x8] sm:$0xff] (%p718_p9) }
 0x8d6   : >> { %1725 = vadd.xlane.f32.xlu1 %v1724_v27  ;;  %v1974_v27 = vld [vmem:[%s3385_s17 + $0x10] sm:$0xff] (%p718_p9) }
 0x8d7   : > { %v2409_v33 = vpack.c.bf16 (%p718_p9), %v1975_v31, %v1974_v27 }
 0x963   : >> { %v1726_v34 = vpop.xlane.xlu1 %1725 }
 0x964   : >> { %v1727_v35 = vmul.f32 0.03125, %v1726_v34 }
 0x966   : >> { %v1728_v36 = vadd.f32 1e-05, %v1727_v35 }
 0x968   : >> { %2530 = vrsqrt.f32 %v1728_v36 }
 0x972   : >> { %v2531_v37 = vpop.eup %2530 }
 0x973   : >> { %v1730_v40 = vmul.f32 %v2531_v37, %v1722_v25  ;;  %v1972_v25 = vld [vmem:[%s3385_s17] sm:$0xff] (%p718_p9) }
 0x974   : > { %v2406_v29 = vpack.c.bf16 (%p718_p9), %v1973_v26, %v1972_v25 }
 0x975   : >> { %v1737_v42 = vmul.f32 %v2243_v39, %v1730_v40 }
 0x977   : >> { %v1744_v43 = vadd.f32 %v2244_v41, %v1737_v42  ;;  %v1976_v41 = vld [vmem:[#allocation2] sm:$0x1] (%p718_p9) }
 0x979   : >> { %2343 = vmatmul.mubr.msk.f32.vlgmr.msra.gmra.mrb[8].mxu1 %vm686_vm0, %v1744_v43 }
 0xa4c   : >> { %v1827_v58 = vpop.f32.mrb[8].mxu1 }
 0xa4d   : >> { %v1828_v59 = vadd.f32 %v2245_v57, %v1827_v58  ;;  %v2344_v60 = vpop.f32.mrb[9].mxu1 }
 0xa4f   : >> { %v1832_v61 = vmul.f32 0.044715, %v1828_v59  ;;  %v1831_v4 = vmul.f32 0.5, %v1828_v59 }
 0xa51   : >> { %v1833_v62 = vmul.f32 %v1832_v61, %v1828_v59 }
 0xa53   : >> { %v1834_v63 = vmul.f32 %v1833_v62, %v1828_v59 }
 0xa55   : >> { %v1835_v0 = vadd.f32 %v1834_v63, %v1828_v59 }
 0xa57   : >> { %v1836_v1 = vmul.f32 0.7978846, %v1835_v0 }
 0xa59   : >> { %2532 = vtanh.f32 %v1836_v1 }
 0xa63   : >> { %v2533_v3 = vpop.eup %2532 }
 0xa64   : >> { %v1838_v5 = vadd.f32 1.0, %v2533_v3 }
 0xa66   : >> { %v1839_v6 = vmul.f32 %v1838_v5, %v1831_v4 }
 0xa68   : >> { %2362 = vmatmul.mubr.msk.f32.vlgmr.msra.gmra.mrb[4].mxu0 %vm1858_vm4, %v1839_v6 }
 0xa69   : > { %2372 = vmatprep.mubr.msk.f32.mxu0 (%p718_p9), %vm2791_vm5, %v2792_v2  ;;  %2407 = vmatpush3.bf16.msra.mxu0 (%p718_p9), %v2406_v29 }
 0xa6a   : > { %2408 = vmatprep.subr.bf16.mxu0 (%p718_p9), %v2790_v19 }
 0xa6d   : > { %2410 = vmatpush3.bf16.msra.mxu0 (%p718_p9), %v2409_v33 }
 0xb3b   : >> { %v1928_v7 = vpop.f32.mrb[4].mxu0 }
 0xb3c   : >> { %v1929_v8 = vadd.f32 %v2248_v18, %v1928_v7  ;;  %v2363_v9 = vpop.f32.mrb[5].mxu0 }
 0xb3e   : >> { %v1932_v30 = vadd.f32 %v1929_v8, %v1744_v43 }
 0xb40   : >> { %v1937_v10 = vsel %vm686_vm0, %v1932_v30, 0.0 }
 0xb41   : >> { %1938 = vadd.xlane.f32.xlu0 %v1937_v10 }
 0xbce   : >> { %v1939_v28 = vpop.xlane.xlu0 %1938 }
 0xbcf   : >> { %v1940_v11 = vmul.f32 0.03125, %v1939_v28 }
 0xbd1   : >> { %v1941_v12 = vsub.f32 %v1932_v30, %v1940_v11 }
 0xbd3   : >> { %v1942_v13 = vmul.f32 %v1941_v12, %v1941_v12 }
 0xbd5   : >> { %v1943_v14 = vsel %vm686_vm0, %v1942_v13, 0.0 }
 0xbd6   : >> { %1944 = vadd.xlane.f32.xlu0 %v1943_v14 }
 0xc63   : >> { %v1945_v15 = vpop.xlane.xlu0 %1944 }
 0xc64   : >> { %v1946_v38 = vmul.f32 0.03125, %v1945_v15 }
 0xc66   : >> { %v1947_v16 = vadd.f32 1e-05, %v1946_v38 }
 0xc68   : >> { %2534 = vrsqrt.f32 %v1947_v16 }
 0xc72   : >> { %v2535_v20 = vpop.eup %2534 }
 0xc73   : >> { %v1949_v49 = vmul.f32 %v2535_v20, %v1941_v12  ;;  %720 = sbr.rel (!%p718_p9) target bundleno = 529 (0x211), region = 173 }
 0xc75   : >> { %v1956_v23 = vmul.f32 %v2250_v21, %v1949_v49 }
 0xc77   : >> { %v1963_v24 = vadd.f32 %v2251_v22, %v1956_v23  }
 0xc79   : >> { %v3384_v17 = vmov %v1963_v24 }
 0xc7a   : > { %v1964_v17 = vsel %vm686_vm0, %v1963_v24, 0.0 }
 0xc7b   : > { %v1965_v32 = vrot.slane %v1964_v17, 4 }
 0xc7d   : > { %v1966_v34 = vadd.f32 %v1965_v32, %v1964_v17 }
 0xc7f   : > { %v1967_v35 = vrot.slane %v1966_v34, 2 }
 0xc81   : > { %v1968_v36 = vadd.f32 %v1967_v35, %v1966_v34 }
 0xc83   : > { %v1969_v37 = vrot.slane %v1968_v36, 1 }
 0xc85   : > { %v1970_v39 = vadd.f32 %v1969_v37, %v1968_v36 }
 0xc87   : > { %v1971_v40 = vmul.f32 0.125, %v1970_v39 }
 0xc89   : > { %2373 = vmatmul.mubr.msk.f32.vlgmr.msra.gmra.mrb[0].mxu0 %vm686_vm0, %v1971_v40 }
 0xd5c   : > { %v2046_v42 = vpop.f32.mrb[0].mxu0 }
 0xd5d   : > { %v2047_v43 = vadd.f32 %v2046_v42, %v1976_v41  ;;  %v2374_v44 = vpop.f32.mrb[1].mxu0 }
 0xd5f   : > { %2051 = vst.msk [vmem:[%s682_s27] sm:$0x1] %vm2050_vm6, %v2047_v43 }
 0xd60 PF: > { %s3386_s20 = sld [smem:[#allocation18_spill]] }
 0xd66   : > { %s34_s29 = sadd.s32 1, %s3386_s20  }
 0xd67   : > { %p31_p10 = scmp.ge.s32.totalorder %s34_s29, 4  }
 0xd69   :  { %33 = sbr.rel (!%p31_p10) target bundleno = 11 (0xb), region = 184 }
 0xd70   :  { %2069 = vsyncpa [#allocation4], 1 }
 0xd71   :  { %2071 = vsyncpa [#allocation4 + $0x1], 1 }
 0xd72   :  { %2072 = vsyncpa [#allocation6], 1 }
 0xd73   :  { %2073 = vsyncpa [#allocation9], 1 }
 0xd74   :  { %2074 = vsyncpa [#allocation12], 1 }

</bundles_post_ra>
